<compile_context>
chip_gen: v7x
topology: tpu7x:2x2x1
jax: 0.10.0
libtpu: 0.0.40
codegen_flags: <defaults>
</compile_context>

<pallas_src>
import functools

import jax
import jax.numpy as jnp
from jax.experimental import pallas as pl
from jax.experimental.pallas import tpu as pltpu

# ---- synthetic model dims (small stand-in for bart-base) --------------------
VOC = 128         # voc_size (lane-dense vocab axis)
UNK = 3           # unk_token
D = 32            # hidden size
H = 4             # attention heads
DH = D // H       # head dim
EPS_LS = 0.1      # CrossEntropyLoss(label_smoothing=0.1)


# ---- small in-kernel helpers -------------------------------------------------
def _softmax(x):
    m = jnp.max(x, axis=-1, keepdims=True)
    e = jnp.exp(x - m)
    return e * pl.reciprocal(jnp.sum(e, axis=-1, keepdims=True), approx=True)


def _sigmoid(x):
    return pl.reciprocal(1.0 + jnp.exp(-x), approx=True)


# ---- fused Pallas kernel -----------------------------------------------------
def fused_kernel(src_ref, trg_ref, dec_ref, enc_ref, mask_ref,
                 wqh_ref, wkh_ref, wvh_ref, woh_ref,
                 wlm_ref, blm_ref, wsr_ref, bsw_ref,
                 log_ref, attn_ref, loss_ref):
    """Per batch element: cross-attn -> LM head -> copy layer -> label-smoothed CE.

    Everything stays in VMEM/registers inside one grid step; outputs are the copy-layer
    log-probs (B,T,V), last-head attention (B,T,S) and a per-batch CE partial sum."""
    dec = dec_ref[0]                                  # (T, D)
    enc = enc_ref[0]                                  # (S, D)
    bias = (mask_ref[0] - 1.0) * 1e9                  # (1, S): 0 keep, -1e9 masked
    scale = 1.0 / (DH ** 0.5)

    # ---- cross-attention: static unroll over heads, no lane slices / concat ----
    dec_out = dec                                     # residual accumulator (T, D)
    probs_last = None
    for h in range(H):
        qh = jnp.dot(dec, wqh_ref[h], preferred_element_type=jnp.float32)   # (T, DH)
        kh = jnp.dot(enc, wkh_ref[h], preferred_element_type=jnp.float32)   # (S, DH)
        vh = jnp.dot(enc, wvh_ref[h], preferred_element_type=jnp.float32)   # (S, DH)
        # q @ k^T via dot_general contracting last dims (no explicit transpose)
        scores = jax.lax.dot_general(
            qh, kh, (((1,), (1,)), ((), ())),
            preferred_element_type=jnp.float32) * scale + bias              # (T, S)
        probs = _softmax(scores)                                            # (T, S)
        # cheaper order: (probs @ V) @ Wo -- (T,DH) intermediate
        ctx = jnp.dot(probs, vh, preferred_element_type=jnp.float32)        # (T, DH)
        dec_out = dec_out + jnp.dot(ctx, woh_ref[h],
                                    preferred_element_type=jnp.float32)     # (T, D)
        probs_last = probs
    attn_ref[0] = probs_last          # cross_attentions[0][:, -1, :, :] -> (T, S)

    # ---- LM head -> output_dict.logits ----
    logits = (jnp.dot(dec_out, wlm_ref[...], preferred_element_type=jnp.float32)
              + blm_ref[...])                                               # (T, V)
    T_, V_ = logits.shape
    S_ = probs_last.shape[-1]

    # ---- CopyLayerVocabExtend.forward ----
    # p = sigmoid(switch(logits)); switch is a (V -> 1) linear, done as a lane reduce.
    p = _sigmoid(jnp.sum(logits * wsr_ref[...], axis=-1, keepdims=True)
                 + bsw_ref[0, 0])                                           # (T, 1)
    gen = (1.0 - p) * _softmax(logits)                                      # (T, V)
    cpy = p * probs_last                                                    # (T, S)
    # scatter_add(2, src_ids, copy_scores) == cpy @ one_hot(src); the one-hot is built
    # transposed (V, S) from the lane-major src row and contracted on its last dim.
    onehot_t = (jax.lax.broadcasted_iota(jnp.int32, (V_, S_), 0)
                == src_ref[0]).astype(jnp.float32)                          # (V, S)
    scat = jax.lax.dot_general(cpy, onehot_t, (((1,), (1,)), ((), ())),
                               preferred_element_type=jnp.float32)          # (T, V)
    log_out = jnp.log(gen + scat + 1e-10)
    log_ref[0] = log_out

    # ---- nn.CrossEntropyLoss(label_smoothing=0.1): log_out treated as logits ----
    # TODO(synk): ignore_index=-100 not handled (demo targets have no padding).
    m = jnp.max(log_out, axis=-1, keepdims=True)
    lse = jnp.log(jnp.sum(jnp.exp(log_out - m), axis=-1, keepdims=True)) + m
    logp = log_out - lse                                                    # (T, V)
    trg = trg_ref[0]                                                        # (T, 1) int32
    onehot_y = (trg == jax.lax.broadcasted_iota(jnp.int32, (T_, V_), 1)
                ).astype(jnp.float32)                                       # (T, V)
    nll = -jnp.sum(onehot_y * logp, axis=-1, keepdims=True)                 # (T, 1)
    smooth = -jnp.sum(logp, axis=-1, keepdims=True) / V_                    # (T, 1)
    per = (1.0 - EPS_LS) * nll + EPS_LS * smooth
    loss_ref[0] = jnp.sum(per, axis=0, keepdims=True)                       # (1, 1) partial


# ---- pallas_call wrapper -----------------------------------------------------
def fused_forward(params, input_ids, trg_ids, dec_h, enc_h, mask):
    B, T, _ = dec_h.shape
    S = enc_h.shape[1]
    V = params["w_lm"].shape[1]

    src3 = input_ids.astype(jnp.int32).reshape(B, 1, S)       # lane-major src ids
    trg3 = trg_ids.astype(jnp.int32).reshape(B, T, 1)
    mask3 = mask.astype(jnp.float32).reshape(B, 1, S)

    # Pre-stack per-head projection weights (free wrapper-side param layout).
    wq_h = params["wq"].reshape(D, H, DH).transpose(1, 0, 2)  # (H, D, DH)
    wk_h = params["wk"].reshape(D, H, DH).transpose(1, 0, 2)
    wv_h = params["wv"].reshape(D, H, DH).transpose(1, 0, 2)
    wo_h = params["wo"].reshape(H, DH, D)                     # (H, DH, D)
    ws_row = params["w_switch"].reshape(1, V)                 # lane-dense switch weight

    log_out, attn, loss_parts = pl.pallas_call(
        fused_kernel,
        out_shape=(jax.ShapeDtypeStruct((B, T, V), jnp.float32),
                   jax.ShapeDtypeStruct((B, T, S), jnp.float32),
                   jax.ShapeDtypeStruct((B, 1, 1), jnp.float32)),
        grid=(B,),
        in_specs=[
            pl.BlockSpec((1, 1, S), lambda b: (b, 0, 0)),     # src ids
            pl.BlockSpec((1, T, 1), lambda b: (b, 0, 0)),     # trg ids (CE targets)
            pl.BlockSpec((1, T, D), lambda b: (b, 0, 0)),     # decoder hidden
            pl.BlockSpec((1, S, D), lambda b: (b, 0, 0)),     # encoder hidden
            pl.BlockSpec((1, 1, S), lambda b: (b, 0, 0)),     # attention mask
            pl.BlockSpec((H, D, DH), lambda b: (0, 0, 0)),    # wq per head
            pl.BlockSpec((H, D, DH), lambda b: (0, 0, 0)),    # wk per head
            pl.BlockSpec((H, D, DH), lambda b: (0, 0, 0)),    # wv per head
            pl.BlockSpec((H, DH, D), lambda b: (0, 0, 0)),    # wo per head
            pl.BlockSpec((D, V), lambda b: (0, 0)),           # w_lm
            pl.BlockSpec((1, V), lambda b: (0, 0)),           # b_lm
            pl.BlockSpec((1, V), lambda b: (0, 0)),           # w_switch (row)
            pl.BlockSpec(memory_space=pltpu.MemorySpace.SMEM),  # b_switch scalar
        ],
        out_specs=(pl.BlockSpec((1, T, V), lambda b: (b, 0, 0)),
                   pl.BlockSpec((1, T, S), lambda b: (b, 0, 0)),
                   pl.BlockSpec((1, 1, 1), lambda b: (b, 0, 0))),
        compiler_params=pltpu.CompilerParams(dimension_semantics=("parallel",)),
    )(src3, trg3, dec_h, enc_h, mask3,
      wq_h, wk_h, wv_h, wo_h,
      params["w_lm"], params["b_lm"], ws_row, params["b_switch"])
    return log_out, attn, loss_parts


# ---- parameter init (deterministic, synthetic) -------------------------------
def init_params(key):
    ks = jax.random.split(key, 8)
    s = 0.02
    return {
        "embed": jax.random.normal(ks[0], (VOC, D), jnp.float32) * s,
        "pos": jax.random.normal(ks[1], (64, D), jnp.float32) * s,
        "wq": jax.random.normal(ks[2], (D, D), jnp.float32) * s,
        "wk": jax.random.normal(ks[3], (D, D), jnp.float32) * s,
        "wv": jax.random.normal(ks[4], (D, D), jnp.float32) * s,
        "wo": jax.random.normal(ks[5], (D, D), jnp.float32) * s,
        "w_lm": jax.random.normal(ks[6], (D, VOC), jnp.float32) * s,
        "b_lm": jnp.zeros((1, VOC), jnp.float32),
        "w_switch": jax.random.normal(ks[7], (VOC, 1), jnp.float32) * s,  # CopyLayer.switch
        "b_switch": jnp.zeros((1, 1), jnp.float32),
    }


# ---- full BARTSeq2Seq.forward ------------------------------------------------
@functools.partial(jax.jit, static_argnames=("generation",))
def bart_seq2seq_forward(params, input_ids, trg_ids, mask, generation=False):
    # input_ids.masked_fill(input_ids >= voc_size, unk_token); same for trg/labels
    src_m = jnp.where(input_ids >= VOC, UNK, input_ids)
    trg_m = jnp.where(trg_ids >= VOC, UNK, trg_ids)
    B, S = input_ids.shape
    T = trg_ids.shape[1]

    # Synthetic BART stand-in (embedding gathers are plain-JAX glue; everything else
    # runs inside the single fused Pallas kernel).
    # TODO(synk): the full pretrained facebook/bart-base encoder/decoder stack is not reproducible here.
    enc_h = jnp.take(params["embed"], src_m, axis=0) + params["pos"][:S][None]
    dec_h = jnp.take(params["embed"], trg_m, axis=0) + params["pos"][:T][None]

    # CopyLayerVocabExtend uses raw input_ids (NOT masked) — matches PyTorch.
    # TODO(synk): dynamic vocab extension when max(src)+1 > voc_size needs data-dependent shapes; skipped.
    log_out, attention, loss_parts = fused_forward(params, input_ids, trg_ids,
                                                   dec_h, enc_h, mask)
    loss = jnp.sum(loss_parts) / (B * T)          # CE mean reduction over B*T tokens
    return log_out, attention, loss


# ---- demo --------------------------------------------------------------------
if __name__ == "__main__":
    key = jax.random.PRNGKey(0)
    pkey, k_src, k_trg = jax.random.split(key, 3)
    params = init_params(pkey)

    B, S, T = 2, 8, 8
    input_ids = jax.random.randint(k_src, (B, S), 0, VOC, dtype=jnp.int32)
    trg_ids = jax.random.randint(k_trg, (B, T), 0, VOC, dtype=jnp.int32)
    mask = jnp.ones((B, S), jnp.float32).at[1, 6:].set(0.0)   # pad last 2 src tokens of batch 1

    log_out, attention, loss = bart_seq2seq_forward(params, input_ids, trg_ids, mask)
    jax.block_until_ready((log_out, attention, loss))

    assert log_out.shape == (B, T, VOC)
    assert attention.shape == (B, T, S)
    assert loss.shape == ()
    assert bool(jnp.isfinite(loss))
    print("KERNEL_OK")
</pallas_src>

<mosaic_0001>
module attributes {stable_mosaic.version = 11 : i64} {
  func.func @fused_kernel(%arg0: i32, %arg1: memref<1x1x8xi32, #tpu.memory_space<vmem>>, %arg2: memref<1x8x1xi32, #tpu.memory_space<vmem>>, %arg3: memref<1x8x32xf32, #tpu.memory_space<vmem>>, %arg4: memref<1x8x32xf32, #tpu.memory_space<vmem>>, %arg5: memref<1x1x8xf32, #tpu.memory_space<vmem>>, %arg6: memref<4x32x8xf32, #tpu.memory_space<vmem>>, %arg7: memref<4x32x8xf32, #tpu.memory_space<vmem>>, %arg8: memref<4x32x8xf32, #tpu.memory_space<vmem>>, %arg9: memref<4x8x32xf32, #tpu.memory_space<vmem>>, %arg10: memref<32x128xf32, #tpu.memory_space<vmem>>, %arg11: memref<1x128xf32, #tpu.memory_space<vmem>>, %arg12: memref<1x128xf32, #tpu.memory_space<vmem>>, %arg13: memref<1x1xf32, #tpu.memory_space<smem>>, %arg14: memref<1x8x128xf32, #tpu.memory_space<vmem>>, %arg15: memref<1x8x8xf32, #tpu.memory_space<vmem>>, %arg16: memref<1x1x1xf32, #tpu.memory_space<vmem>>) attributes {dimension_semantics = [#tpu.dimension_semantics<parallel>], iteration_bounds = array<i64: 2>, scalar_prefetch = 0 : i64, scratch_operands = 0 : i64, tpu.core_type = #tpu.core_type<tc>, window_params = [{transform_indices = @transform_0, window_bounds = array<i64: 1, 1, 8>}, {transform_indices = @transform_1, window_bounds = array<i64: 1, 8, 1>}, {transform_indices = @transform_2, window_bounds = array<i64: 1, 8, 32>}, {transform_indices = @transform_3, window_bounds = array<i64: 1, 8, 32>}, {transform_indices = @transform_4, window_bounds = array<i64: 1, 1, 8>}, {pipeline_mode = #tpu.pipeline_mode<synchronous>, transform_indices = @transform_5, window_bounds = array<i64: 4, 32, 8>}, {pipeline_mode = #tpu.pipeline_mode<synchronous>, transform_indices = @transform_6, window_bounds = array<i64: 4, 32, 8>}, {pipeline_mode = #tpu.pipeline_mode<synchronous>, transform_indices = @transform_7, window_bounds = array<i64: 4, 32, 8>}, {pipeline_mode = #tpu.pipeline_mode<synchronous>, transform_indices = @transform_8, window_bounds = array<i64: 4, 8, 32>}, {pipeline_mode = #tpu.pipeline_mode<synchronous>, transform_indices = @transform_9, window_bounds = array<i64: 32, 128>}, {pipeline_mode = #tpu.pipeline_mode<synchronous>, transform_indices = @transform_10, window_bounds = array<i64: 1, 128>}, {pipeline_mode = #tpu.pipeline_mode<synchronous>, transform_indices = @transform_11, window_bounds = array<i64: 1, 128>}, {transform_indices = @transform_12, window_bounds = array<i64: 1, 1>}, {transform_indices = @transform_13, window_bounds = array<i64: 1, 8, 128>}, {transform_indices = @transform_14, window_bounds = array<i64: 1, 8, 8>}, {transform_indices = @transform_15, window_bounds = array<i64: 1, 1, 1>}]} {
    %c0 = arith.constant 0 : index
    %c0_0 = arith.constant 0 : index
    %c0_1 = arith.constant 0 : index
    %0 = vector.load %arg3[%c0, %c0_0, %c0_1] : memref<1x8x32xf32, #tpu.memory_space<vmem>>, vector<1x8x32xf32>
    %1 = vector.shape_cast %0 : vector<1x8x32xf32> to vector<8x32xf32>
    %c0_2 = arith.constant 0 : index
    %c0_3 = arith.constant 0 : index
    %c0_4 = arith.constant 0 : index
    %2 = vector.load %arg4[%c0_2, %c0_3, %c0_4] : memref<1x8x32xf32, #tpu.memory_space<vmem>>, vector<1x8x32xf32>
    %3 = vector.shape_cast %2 : vector<1x8x32xf32> to vector<8x32xf32>
    %c0_5 = arith.constant 0 : index
    %c0_6 = arith.constant 0 : index
    %c0_7 = arith.constant 0 : index
    %4 = vector.load %arg5[%c0_5, %c0_6, %c0_7] : memref<1x1x8xf32, #tpu.memory_space<vmem>>, vector<1x1x8xf32>
    %5 = vector.shape_cast %4 : vector<1x1x8xf32> to vector<1x8xf32>
    %cst = arith.constant 1.000000e+00 : f32
    %6 = vector.broadcast %cst : f32 to vector<1x8xf32>
    %7 = arith.subf %5, %6 : vector<1x8xf32>
    %cst_8 = arith.constant 1.000000e+09 : f32
    %8 = vector.broadcast %cst_8 : f32 to vector<1x8xf32>
    %9 = arith.mulf %7, %8 : vector<1x8xf32>
    %c0_9 = arith.constant 0 : index
    %c0_10 = arith.constant 0 : index
    %c0_11 = arith.constant 0 : index
    %10 = vector.load %arg6[%c0_9, %c0_10, %c0_11] : memref<4x32x8xf32, #tpu.memory_space<vmem>>, vector<1x32x8xf32>
    %11 = vector.shape_cast %10 : vector<1x32x8xf32> to vector<32x8xf32>
    %cst_12 = arith.constant dense<0.000000e+00> : vector<8x8xf32>
    %12 = tpu.matmul %1, %11, %cst_12 {dimension_numbers = #tpu.dot_dimension_numbers<[1], [0], [0], [1], [0, 0, 1, 1], [], []>} : vector<8x32xf32>, vector<32x8xf32>, vector<8x8xf32> -> vector<8x8xf32>
    %c0_13 = arith.constant 0 : index
    %c0_14 = arith.constant 0 : index
    %c0_15 = arith.constant 0 : index
    %13 = vector.load %arg7[%c0_13, %c0_14, %c0_15] : memref<4x32x8xf32, #tpu.memory_space<vmem>>, vector<1x32x8xf32>
    %14 = vector.shape_cast %13 : vector<1x32x8xf32> to vector<32x8xf32>
    %cst_16 = arith.constant dense<0.000000e+00> : vector<8x8xf32>
    %15 = tpu.matmul %3, %14, %cst_16 {dimension_numbers = #tpu.dot_dimension_numbers<[1], [0], [0], [1], [0, 0, 1, 1], [], []>} : vector<8x32xf32>, vector<32x8xf32>, vector<8x8xf32> -> vector<8x8xf32>
    %c0_17 = arith.constant 0 : index
    %c0_18 = arith.constant 0 : index
    %c0_19 = arith.constant 0 : index
    %16 = vector.load %arg8[%c0_17, %c0_18, %c0_19] : memref<4x32x8xf32, #tpu.memory_space<vmem>>, vector<1x32x8xf32>
    %17 = vector.shape_cast %16 : vector<1x32x8xf32> to vector<32x8xf32>
    %cst_20 = arith.constant dense<0.000000e+00> : vector<8x8xf32>
    %18 = tpu.matmul %3, %17, %cst_20 {dimension_numbers = #tpu.dot_dimension_numbers<[1], [0], [0], [1], [0, 0, 1, 1], [], []>} : vector<8x32xf32>, vector<32x8xf32>, vector<8x8xf32> -> vector<8x8xf32>
    %cst_21 = arith.constant dense<0.000000e+00> : vector<8x8xf32>
    %19 = tpu.matmul %12, %15, %cst_21 {dimension_numbers = #tpu.dot_dimension_numbers<[1], [1], [0], [0], [0, 0, 1, 0], [], []>} : vector<8x8xf32>, vector<8x8xf32>, vector<8x8xf32> -> vector<8x8xf32>
    %cst_22 = arith.constant 0.353553385 : f32
    %20 = vector.broadcast %cst_22 : f32 to vector<8x8xf32>
    %21 = arith.mulf %19, %20 : vector<8x8xf32>
    %22 = vector.broadcast %9 : vector<1x8xf32> to vector<8x8xf32>
    %23 = arith.addf %21, %22 : vector<8x8xf32>
    %cst_23 = arith.constant dense<0xFF800000> : vector<8xf32>
    %24 = vector.multi_reduction <maximumf>, %23, %cst_23 [1] : vector<8x8xf32> to vector<8xf32>
    %25 = vector.shape_cast %24 : vector<8xf32> to vector<8x1xf32>
    %26 = vector.broadcast %25 : vector<8x1xf32> to vector<8x8xf32>
    %27 = arith.subf %23, %26 : vector<8x8xf32>
    %28 = math.exp %27 : vector<8x8xf32>
    %cst_24 = arith.constant dense<0.000000e+00> : vector<8xf32>
    %29 = vector.multi_reduction <add>, %28, %cst_24 [1] : vector<8x8xf32> to vector<8xf32>
    %30 = vector.shape_cast %29 : vector<8xf32> to vector<8x1xf32>
    %31 = tpu.reciprocal %30 {approx = true} : vector<8x1xf32> -> vector<8x1xf32>
    %32 = vector.broadcast %31 : vector<8x1xf32> to vector<8x8xf32>
    %33 = arith.mulf %28, %32 : vector<8x8xf32>
    %cst_25 = arith.constant dense<0.000000e+00> : vector<8x8xf32>
    %34 = tpu.matmul %33, %18, %cst_25 {dimension_numbers = #tpu.dot_dimension_numbers<[1], [0], [0], [1], [0, 0, 1, 1], [], []>} : vector<8x8xf32>, vector<8x8xf32>, vector<8x8xf32> -> vector<8x8xf32>
    %c0_26 = arith.constant 0 : index
    %c0_27 = arith.constant 0 : index
    %c0_28 = arith.constant 0 : index
    %35 = vector.load %arg9[%c0_26, %c0_27, %c0_28] : memref<4x8x32xf32, #tpu.memory_space<vmem>>, vector<1x8x32xf32>
    %36 = vector.shape_cast %35 : vector<1x8x32xf32> to vector<8x32xf32>
    %cst_29 = arith.constant dense<0.000000e+00> : vector<8x32xf32>
    %37 = tpu.matmul %34, %36, %cst_29 {dimension_numbers = #tpu.dot_dimension_numbers<[1], [0], [0], [1], [0, 0, 1, 1], [], []>} : vector<8x8xf32>, vector<8x32xf32>, vector<8x32xf32> -> vector<8x32xf32>
    %38 = arith.addf %1, %37 : vector<8x32xf32>
    %c1 = arith.constant 1 : index
    %c0_30 = arith.constant 0 : index
    %c0_31 = arith.constant 0 : index
    %39 = vector.load %arg6[%c1, %c0_30, %c0_31] : memref<4x32x8xf32, #tpu.memory_space<vmem>>, vector<1x32x8xf32>
    %40 = vector.shape_cast %39 : vector<1x32x8xf32> to vector<32x8xf32>
    %cst_32 = arith.constant dense<0.000000e+00> : vector<8x8xf32>
    %41 = tpu.matmul %1, %40, %cst_32 {dimension_numbers = #tpu.dot_dimension_numbers<[1], [0], [0], [1], [0, 0, 1, 1], [], []>} : vector<8x32xf32>, vector<32x8xf32>, vector<8x8xf32> -> vector<8x8xf32>
    %c1_33 = arith.constant 1 : index
    %c0_34 = arith.constant 0 : index
    %c0_35 = arith.constant 0 : index
    %42 = vector.load %arg7[%c1_33, %c0_34, %c0_35] : memref<4x32x8xf32, #tpu.memory_space<vmem>>, vector<1x32x8xf32>
    %43 = vector.shape_cast %42 : vector<1x32x8xf32> to vector<32x8xf32>
    %cst_36 = arith.constant dense<0.000000e+00> : vector<8x8xf32>
    %44 = tpu.matmul %3, %43, %cst_36 {dimension_numbers = #tpu.dot_dimension_numbers<[1], [0], [0], [1], [0, 0, 1, 1], [], []>} : vector<8x32xf32>, vector<32x8xf32>, vector<8x8xf32> -> vector<8x8xf32>
    %c1_37 = arith.constant 1 : index
    %c0_38 = arith.constant 0 : index
    %c0_39 = arith.constant 0 : index
    %45 = vector.load %arg8[%c1_37, %c0_38, %c0_39] : memref<4x32x8xf32, #tpu.memory_space<vmem>>, vector<1x32x8xf32>
    %46 = vector.shape_cast %45 : vector<1x32x8xf32> to vector<32x8xf32>
    %cst_40 = arith.constant dense<0.000000e+00> : vector<8x8xf32>
    %47 = tpu.matmul %3, %46, %cst_40 {dimension_numbers = #tpu.dot_dimension_numbers<[1], [0], [0], [1], [0, 0, 1, 1], [], []>} : vector<8x32xf32>, vector<32x8xf32>, vector<8x8xf32> -> vector<8x8xf32>
    %cst_41 = arith.constant dense<0.000000e+00> : vector<8x8xf32>
    %48 = tpu.matmul %41, %44, %cst_41 {dimension_numbers = #tpu.dot_dimension_numbers<[1], [1], [0], [0], [0, 0, 1, 0], [], []>} : vector<8x8xf32>, vector<8x8xf32>, vector<8x8xf32> -> vector<8x8xf32>
    %cst_42 = arith.constant 0.353553385 : f32
    %49 = vector.broadcast %cst_42 : f32 to vector<8x8xf32>
    %50 = arith.mulf %48, %49 : vector<8x8xf32>
    %51 = vector.broadcast %9 : vector<1x8xf32> to vector<8x8xf32>
    %52 = arith.addf %50, %51 : vector<8x8xf32>
    %cst_43 = arith.constant dense<0xFF800000> : vector<8xf32>
    %53 = vector.multi_reduction <maximumf>, %52, %cst_43 [1] : vector<8x8xf32> to vector<8xf32>
    %54 = vector.shape_cast %53 : vector<8xf32> to vector<8x1xf32>
    %55 = vector.broadcast %54 : vector<8x1xf32> to vector<8x8xf32>
    %56 = arith.subf %52, %55 : vector<8x8xf32>
    %57 = math.exp %56 : vector<8x8xf32>
    %cst_44 = arith.constant dense<0.000000e+00> : vector<8xf32>
    %58 = vector.multi_reduction <add>, %57, %cst_44 [1] : vector<8x8xf32> to vector<8xf32>
    %59 = vector.shape_cast %58 : vector<8xf32> to vector<8x1xf32>
    %60 = tpu.reciprocal %59 {approx = true} : vector<8x1xf32> -> vector<8x1xf32>
    %61 = vector.broadcast %60 : vector<8x1xf32> to vector<8x8xf32>
    %62 = arith.mulf %57, %61 : vector<8x8xf32>
    %cst_45 = arith.constant dense<0.000000e+00> : vector<8x8xf32>
    %63 = tpu.matmul %62, %47, %cst_45 {dimension_numbers = #tpu.dot_dimension_numbers<[1], [0], [0], [1], [0, 0, 1, 1], [], []>} : vector<8x8xf32>, vector<8x8xf32>, vector<8x8xf32> -> vector<8x8xf32>
    %c1_46 = arith.constant 1 : index
    %c0_47 = arith.constant 0 : index
    %c0_48 = arith.constant 0 : index
    %64 = vector.load %arg9[%c1_46, %c0_47, %c0_48] : memref<4x8x32xf32, #tpu.memory_space<vmem>>, vector<1x8x32xf32>
    %65 = vector.shape_cast %64 : vector<1x8x32xf32> to vector<8x32xf32>
    %cst_49 = arith.constant dense<0.000000e+00> : vector<8x32xf32>
    %66 = tpu.matmul %63, %65, %cst_49 {dimension_numbers = #tpu.dot_dimension_numbers<[1], [0], [0], [1], [0, 0, 1, 1], [], []>} : vector<8x8xf32>, vector<8x32xf32>, vector<8x32xf32> -> vector<8x32xf32>
    %67 = arith.addf %38, %66 : vector<8x32xf32>
    %c2 = arith.constant 2 : index
    %c0_50 = arith.constant 0 : index
    %c0_51 = arith.constant 0 : index
    %68 = vector.load %arg6[%c2, %c0_50, %c0_51] : memref<4x32x8xf32, #tpu.memory_space<vmem>>, vector<1x32x8xf32>
    %69 = vector.shape_cast %68 : vector<1x32x8xf32> to vector<32x8xf32>
    %cst_52 = arith.constant dense<0.000000e+00> : vector<8x8xf32>
    %70 = tpu.matmul %1, %69, %cst_52 {dimension_numbers = #tpu.dot_dimension_numbers<[1], [0], [0], [1], [0, 0, 1, 1], [], []>} : vector<8x32xf32>, vector<32x8xf32>, vector<8x8xf32> -> vector<8x8xf32>
    %c2_53 = arith.constant 2 : index
    %c0_54 = arith.constant 0 : index
    %c0_55 = arith.constant 0 : index
    %71 = vector.load %arg7[%c2_53, %c0_54, %c0_55] : memref<4x32x8xf32, #tpu.memory_space<vmem>>, vector<1x32x8xf32>
    %72 = vector.shape_cast %71 : vector<1x32x8xf32> to vector<32x8xf32>
    %cst_56 = arith.constant dense<0.000000e+00> : vector<8x8xf32>
    %73 = tpu.matmul %3, %72, %cst_56 {dimension_numbers = #tpu.dot_dimension_numbers<[1], [0], [0], [1], [0, 0, 1, 1], [], []>} : vector<8x32xf32>, vector<32x8xf32>, vector<8x8xf32> -> vector<8x8xf32>
    %c2_57 = arith.constant 2 : index
    %c0_58 = arith.constant 0 : index
    %c0_59 = arith.constant 0 : index
    %74 = vector.load %arg8[%c2_57, %c0_58, %c0_59] : memref<4x32x8xf32, #tpu.memory_space<vmem>>, vector<1x32x8xf32>
    %75 = vector.shape_cast %74 : vector<1x32x8xf32> to vector<32x8xf32>
    %cst_60 = arith.constant dense<0.000000e+00> : vector<8x8xf32>
    %76 = tpu.matmul %3, %75, %cst_60 {dimension_numbers = #tpu.dot_dimension_numbers<[1], [0], [0], [1], [0, 0, 1, 1], [], []>} : vector<8x32xf32>, vector<32x8xf32>, vector<8x8xf32> -> vector<8x8xf32>
    %cst_61 = arith.constant dense<0.000000e+00> : vector<8x8xf32>
    %77 = tpu.matmul %70, %73, %cst_61 {dimension_numbers = #tpu.dot_dimension_numbers<[1], [1], [0], [0], [0, 0, 1, 0], [], []>} : vector<8x8xf32>, vector<8x8xf32>, vector<8x8xf32> -> vector<8x8xf32>
    %cst_62 = arith.constant 0.353553385 : f32
    %78 = vector.broadcast %cst_62 : f32 to vector<8x8xf32>
    %79 = arith.mulf %77, %78 : vector<8x8xf32>
    %80 = vector.broadcast %9 : vector<1x8xf32> to vector<8x8xf32>
    %81 = arith.addf %79, %80 : vector<8x8xf32>
    %cst_63 = arith.constant dense<0xFF800000> : vector<8xf32>
    %82 = vector.multi_reduction <maximumf>, %81, %cst_63 [1] : vector<8x8xf32> to vector<8xf32>
    %83 = vector.shape_cast %82 : vector<8xf32> to vector<8x1xf32>
    %84 = vector.broadcast %83 : vector<8x1xf32> to vector<8x8xf32>
    %85 = arith.subf %81, %84 : vector<8x8xf32>
    %86 = math.exp %85 : vector<8x8xf32>
    %cst_64 = arith.constant dense<0.000000e+00> : vector<8xf32>
    %87 = vector.multi_reduction <add>, %86, %cst_64 [1] : vector<8x8xf32> to vector<8xf32>
    %88 = vector.shape_cast %87 : vector<8xf32> to vector<8x1xf32>
    %89 = tpu.reciprocal %88 {approx = true} : vector<8x1xf32> -> vector<8x1xf32>
    %90 = vector.broadcast %89 : vector<8x1xf32> to vector<8x8xf32>
    %91 = arith.mulf %86, %90 : vector<8x8xf32>
    %cst_65 = arith.constant dense<0.000000e+00> : vector<8x8xf32>
    %92 = tpu.matmul %91, %76, %cst_65 {dimension_numbers = #tpu.dot_dimension_numbers<[1], [0], [0], [1], [0, 0, 1, 1], [], []>} : vector<8x8xf32>, vector<8x8xf32>, vector<8x8xf32> -> vector<8x8xf32>
    %c2_66 = arith.constant 2 : index
    %c0_67 = arith.constant 0 : index
    %c0_68 = arith.constant 0 : index
    %93 = vector.load %arg9[%c2_66, %c0_67, %c0_68] : memref<4x8x32xf32, #tpu.memory_space<vmem>>, vector<1x8x32xf32>
    %94 = vector.shape_cast %93 : vector<1x8x32xf32> to vector<8x32xf32>
    %cst_69 = arith.constant dense<0.000000e+00> : vector<8x32xf32>
    %95 = tpu.matmul %92, %94, %cst_69 {dimension_numbers = #tpu.dot_dimension_numbers<[1], [0], [0], [1], [0, 0, 1, 1], [], []>} : vector<8x8xf32>, vector<8x32xf32>, vector<8x32xf32> -> vector<8x32xf32>
    %96 = arith.addf %67, %95 : vector<8x32xf32>
    %c3 = arith.constant 3 : index
    %c0_70 = arith.constant 0 : index
    %c0_71 = arith.constant 0 : index
    %97 = vector.load %arg6[%c3, %c0_70, %c0_71] : memref<4x32x8xf32, #tpu.memory_space<vmem>>, vector<1x32x8xf32>
    %98 = vector.shape_cast %97 : vector<1x32x8xf32> to vector<32x8xf32>
    %cst_72 = arith.constant dense<0.000000e+00> : vector<8x8xf32>
    %99 = tpu.matmul %1, %98, %cst_72 {dimension_numbers = #tpu.dot_dimension_numbers<[1], [0], [0], [1], [0, 0, 1, 1], [], []>} : vector<8x32xf32>, vector<32x8xf32>, vector<8x8xf32> -> vector<8x8xf32>
    %c3_73 = arith.constant 3 : index
    %c0_74 = arith.constant 0 : index
    %c0_75 = arith.constant 0 : index
    %100 = vector.load %arg7[%c3_73, %c0_74, %c0_75] : memref<4x32x8xf32, #tpu.memory_space<vmem>>, vector<1x32x8xf32>
    %101 = vector.shape_cast %100 : vector<1x32x8xf32> to vector<32x8xf32>
    %cst_76 = arith.constant dense<0.000000e+00> : vector<8x8xf32>
    %102 = tpu.matmul %3, %101, %cst_76 {dimension_numbers = #tpu.dot_dimension_numbers<[1], [0], [0], [1], [0, 0, 1, 1], [], []>} : vector<8x32xf32>, vector<32x8xf32>, vector<8x8xf32> -> vector<8x8xf32>
    %c3_77 = arith.constant 3 : index
    %c0_78 = arith.constant 0 : index
    %c0_79 = arith.constant 0 : index
    %103 = vector.load %arg8[%c3_77, %c0_78, %c0_79] : memref<4x32x8xf32, #tpu.memory_space<vmem>>, vector<1x32x8xf32>
    %104 = vector.shape_cast %103 : vector<1x32x8xf32> to vector<32x8xf32>
    %cst_80 = arith.constant dense<0.000000e+00> : vector<8x8xf32>
    %105 = tpu.matmul %3, %104, %cst_80 {dimension_numbers = #tpu.dot_dimension_numbers<[1], [0], [0], [1], [0, 0, 1, 1], [], []>} : vector<8x32xf32>, vector<32x8xf32>, vector<8x8xf32> -> vector<8x8xf32>
    %cst_81 = arith.constant dense<0.000000e+00> : vector<8x8xf32>
    %106 = tpu.matmul %99, %102, %cst_81 {dimension_numbers = #tpu.dot_dimension_numbers<[1], [1], [0], [0], [0, 0, 1, 0], [], []>} : vector<8x8xf32>, vector<8x8xf32>, vector<8x8xf32> -> vector<8x8xf32>
    %cst_82 = arith.constant 0.353553385 : f32
    %107 = vector.broadcast %cst_82 : f32 to vector<8x8xf32>
    %108 = arith.mulf %106, %107 : vector<8x8xf32>
    %109 = vector.broadcast %9 : vector<1x8xf32> to vector<8x8xf32>
    %110 = arith.addf %108, %109 : vector<8x8xf32>
    %cst_83 = arith.constant dense<0xFF800000> : vector<8xf32>
    %111 = vector.multi_reduction <maximumf>, %110, %cst_83 [1] : vector<8x8xf32> to vector<8xf32>
    %112 = vector.shape_cast %111 : vector<8xf32> to vector<8x1xf32>
    %113 = vector.broadcast %112 : vector<8x1xf32> to vector<8x8xf32>
    %114 = arith.subf %110, %113 : vector<8x8xf32>
    %115 = math.exp %114 : vector<8x8xf32>
    %cst_84 = arith.constant dense<0.000000e+00> : vector<8xf32>
    %116 = vector.multi_reduction <add>, %115, %cst_84 [1] : vector<8x8xf32> to vector<8xf32>
    %117 = vector.shape_cast %116 : vector<8xf32> to vector<8x1xf32>
    %118 = tpu.reciprocal %117 {approx = true} : vector<8x1xf32> -> vector<8x1xf32>
    %119 = vector.broadcast %118 : vector<8x1xf32> to vector<8x8xf32>
    %120 = arith.mulf %115, %119 : vector<8x8xf32>
    %cst_85 = arith.constant dense<0.000000e+00> : vector<8x8xf32>
    %121 = tpu.matmul %120, %105, %cst_85 {dimension_numbers = #tpu.dot_dimension_numbers<[1], [0], [0], [1], [0, 0, 1, 1], [], []>} : vector<8x8xf32>, vector<8x8xf32>, vector<8x8xf32> -> vector<8x8xf32>
    %c3_86 = arith.constant 3 : index
    %c0_87 = arith.constant 0 : index
    %c0_88 = arith.constant 0 : index
    %122 = vector.load %arg9[%c3_86, %c0_87, %c0_88] : memref<4x8x32xf32, #tpu.memory_space<vmem>>, vector<1x8x32xf32>
    %123 = vector.shape_cast %122 : vector<1x8x32xf32> to vector<8x32xf32>
    %cst_89 = arith.constant dense<0.000000e+00> : vector<8x32xf32>
    %124 = tpu.matmul %121, %123, %cst_89 {dimension_numbers = #tpu.dot_dimension_numbers<[1], [0], [0], [1], [0, 0, 1, 1], [], []>} : vector<8x8xf32>, vector<8x32xf32>, vector<8x32xf32> -> vector<8x32xf32>
    %125 = arith.addf %96, %124 : vector<8x32xf32>
    %c0_90 = arith.constant 0 : index
    %c0_91 = arith.constant 0 : index
    %c0_92 = arith.constant 0 : index
    %126 = vector.load %arg15[%c0_90, %c0_91, %c0_92] : memref<1x8x8xf32, #tpu.memory_space<vmem>>, vector<1x8x8xf32>
    %127 = vector.shape_cast %126 : vector<1x8x8xf32> to vector<8x8xf32>
    %128 = vector.shape_cast %120 : vector<8x8xf32> to vector<1x8x8xf32>
    tpu.vector_store %arg15[%c0_90, %c0_91, %c0_92], %128 {strides = array<i32>} : memref<1x8x8xf32, #tpu.memory_space<vmem>>, vector<1x8x8xf32>,
    %c0_93 = arith.constant 0 : index
    %c0_94 = arith.constant 0 : index
    %129 = vector.load %arg10[%c0_93, %c0_94] : memref<32x128xf32, #tpu.memory_space<vmem>>, vector<32x128xf32>
    %cst_95 = arith.constant dense<0.000000e+00> : vector<8x128xf32>
    %130 = tpu.matmul %125, %129, %cst_95 {dimension_numbers = #tpu.dot_dimension_numbers<[1], [0], [0], [1], [0, 0, 1, 1], [], []>} : vector<8x32xf32>, vector<32x128xf32>, vector<8x128xf32> -> vector<8x128xf32>
    %c0_96 = arith.constant 0 : index
    %c0_97 = arith.constant 0 : index
    %131 = vector.load %arg11[%c0_96, %c0_97] : memref<1x128xf32, #tpu.memory_space<vmem>>, vector<1x128xf32>
    %132 = vector.broadcast %131 : vector<1x128xf32> to vector<8x128xf32>
    %133 = arith.addf %130, %132 : vector<8x128xf32>
    %c0_98 = arith.constant 0 : index
    %c0_99 = arith.constant 0 : index
    %134 = vector.load %arg12[%c0_98, %c0_99] : memref<1x128xf32, #tpu.memory_space<vmem>>, vector<1x128xf32>
    %135 = vector.broadcast %134 : vector<1x128xf32> to vector<8x128xf32>
    %136 = arith.mulf %133, %135 : vector<8x128xf32>
    %cst_100 = arith.constant dense<0.000000e+00> : vector<8xf32>
    %137 = vector.multi_reduction <add>, %136, %cst_100 [1] : vector<8x128xf32> to vector<8xf32>
    %138 = vector.shape_cast %137 : vector<8xf32> to vector<8x1xf32>
    %c0_101 = arith.constant 0 : index
    %c0_102 = arith.constant 0 : index
    %139 = memref.load %arg13[%c0_101, %c0_102] : memref<1x1xf32, #tpu.memory_space<smem>>
    %140 = vector.broadcast %139 : f32 to vector<8x1xf32>
    %141 = arith.addf %138, %140 : vector<8x1xf32>
    %cst_103 = arith.constant 0.000000e+00 : f32
    %142 = vector.broadcast %cst_103 : f32 to vector<8x1xf32>
    %143 = arith.subf %142, %141 : vector<8x1xf32>
    %144 = math.exp %143 : vector<8x1xf32>
    %cst_104 = arith.constant 1.000000e+00 : f32
    %145 = vector.broadcast %cst_104 : f32 to vector<8x1xf32>
    %146 = arith.addf %145, %144 : vector<8x1xf32>
    %147 = tpu.reciprocal %146 {approx = true} : vector<8x1xf32> -> vector<8x1xf32>
    %cst_105 = arith.constant 1.000000e+00 : f32
    %148 = vector.broadcast %cst_105 : f32 to vector<8x1xf32>
    %149 = arith.subf %148, %147 : vector<8x1xf32>
    %cst_106 = arith.constant dense<0xFF800000> : vector<8xf32>
    %150 = vector.multi_reduction <maximumf>, %133, %cst_106 [1] : vector<8x128xf32> to vector<8xf32>
    %151 = vector.shape_cast %150 : vector<8xf32> to vector<8x1xf32>
    %152 = vector.broadcast %151 : vector<8x1xf32> to vector<8x128xf32>
    %153 = arith.subf %133, %152 : vector<8x128xf32>
    %154 = math.exp %153 : vector<8x128xf32>
    %cst_107 = arith.constant dense<0.000000e+00> : vector<8xf32>
    %155 = vector.multi_reduction <add>, %154, %cst_107 [1] : vector<8x128xf32> to vector<8xf32>
    %156 = vector.shape_cast %155 : vector<8xf32> to vector<8x1xf32>
    %157 = tpu.reciprocal %156 {approx = true} : vector<8x1xf32> -> vector<8x1xf32>
    %158 = vector.broadcast %157 : vector<8x1xf32> to vector<8x128xf32>
    %159 = arith.mulf %154, %158 : vector<8x128xf32>
    %160 = vector.broadcast %149 : vector<8x1xf32> to vector<8x128xf32>
    %161 = arith.mulf %160, %159 : vector<8x128xf32>
    %162 = vector.broadcast %147 : vector<8x1xf32> to vector<8x8xf32>
    %163 = arith.mulf %162, %120 : vector<8x8xf32>
    %164 = tpu.iota {dimensions = array<i32: 0>} : vector<128x8xi32>
    %c0_108 = arith.constant 0 : index
    %c0_109 = arith.constant 0 : index
    %c0_110 = arith.constant 0 : index
    %165 = vector.load %arg1[%c0_108, %c0_109, %c0_110] : memref<1x1x8xi32, #tpu.memory_space<vmem>>, vector<1x1x8xi32>
    %166 = vector.shape_cast %165 : vector<1x1x8xi32> to vector<1x8xi32>
    %167 = vector.broadcast %166 : vector<1x8xi32> to vector<128x8xi32>
    %168 = arith.cmpi eq, %164, %167 : vector<128x8xi32>
    %169 = arith.extui %168 : vector<128x8xi1> to vector<128x8xi32>
    %170 = arith.sitofp %169 : vector<128x8xi32> to vector<128x8xf32>
    %cst_111 = arith.constant dense<0.000000e+00> : vector<8x128xf32>
    %171 = tpu.matmul %163, %170, %cst_111 {dimension_numbers = #tpu.dot_dimension_numbers<[1], [1], [0], [0], [0, 0, 1, 0], [], []>} : vector<8x8xf32>, vector<128x8xf32>, vector<8x128xf32> -> vector<8x128xf32>
    %172 = arith.addf %161, %171 : vector<8x128xf32>
    %cst_112 = arith.constant 1.000000e-10 : f32
    %173 = vector.broadcast %cst_112 : f32 to vector<8x128xf32>
    %174 = arith.addf %172, %173 : vector<8x128xf32>
    %175 = math.log %174 : vector<8x128xf32>
    %c0_113 = arith.constant 0 : index
    %c0_114 = arith.constant 0 : index
    %c0_115 = arith.constant 0 : index
    %176 = vector.load %arg14[%c0_113, %c0_114, %c0_115] : memref<1x8x128xf32, #tpu.memory_space<vmem>>, vector<1x8x128xf32>
    %177 = vector.shape_cast %176 : vector<1x8x128xf32> to vector<8x128xf32>
    %178 = vector.shape_cast %175 : vector<8x128xf32> to vector<1x8x128xf32>
    tpu.vector_store %arg14[%c0_113, %c0_114, %c0_115], %178 {strides = array<i32>} : memref<1x8x128xf32, #tpu.memory_space<vmem>>, vector<1x8x128xf32>,
    %cst_116 = arith.constant dense<0xFF800000> : vector<8xf32>
    %179 = vector.multi_reduction <maximumf>, %175, %cst_116 [1] : vector<8x128xf32> to vector<8xf32>
    %180 = vector.shape_cast %179 : vector<8xf32> to vector<8x1xf32>
    %181 = vector.broadcast %180 : vector<8x1xf32> to vector<8x128xf32>
    %182 = arith.subf %175, %181 : vector<8x128xf32>
    %183 = math.exp %182 : vector<8x128xf32>
    %cst_117 = arith.constant dense<0.000000e+00> : vector<8xf32>
    %184 = vector.multi_reduction <add>, %183, %cst_117 [1] : vector<8x128xf32> to vector<8xf32>
    %185 = vector.shape_cast %184 : vector<8xf32> to vector<8x1xf32>
    %186 = math.log %185 : vector<8x1xf32>
    %187 = arith.addf %186, %180 : vector<8x1xf32>
    %188 = vector.broadcast %187 : vector<8x1xf32> to vector<8x128xf32>
    %189 = arith.subf %175, %188 : vector<8x128xf32>
    %c0_118 = arith.constant 0 : index
    %c0_119 = arith.constant 0 : index
    %c0_120 = arith.constant 0 : index
    %190 = vector.load %arg2[%c0_118, %c0_119, %c0_120] : memref<1x8x1xi32, #tpu.memory_space<vmem>>, vector<1x8x1xi32>
    %191 = vector.shape_cast %190 : vector<1x8x1xi32> to vector<8x1xi32>
    %192 = tpu.iota {dimensions = array<i32: 1>} : vector<8x128xi32>
    %193 = vector.broadcast %191 : vector<8x1xi32> to vector<8x128xi32>
    %194 = arith.cmpi eq, %193, %192 : vector<8x128xi32>
    %195 = arith.extui %194 : vector<8x128xi1> to vector<8x128xi32>
    %196 = arith.sitofp %195 : vector<8x128xi32> to vector<8x128xf32>
    %197 = arith.mulf %196, %189 : vector<8x128xf32>
    %cst_121 = arith.constant dense<0.000000e+00> : vector<8xf32>
    %198 = vector.multi_reduction <add>, %197, %cst_121 [1] : vector<8x128xf32> to vector<8xf32>
    %199 = vector.shape_cast %198 : vector<8xf32> to vector<8x1xf32>
    %cst_122 = arith.constant 0.000000e+00 : f32
    %200 = vector.broadcast %cst_122 : f32 to vector<8x1xf32>
    %201 = arith.subf %200, %199 : vector<8x1xf32>
    %cst_123 = arith.constant dense<0.000000e+00> : vector<8xf32>
    %202 = vector.multi_reduction <add>, %189, %cst_123 [1] : vector<8x128xf32> to vector<8xf32>
    %203 = vector.shape_cast %202 : vector<8xf32> to vector<8x1xf32>
    %cst_124 = arith.constant 0.000000e+00 : f32
    %204 = vector.broadcast %cst_124 : f32 to vector<8x1xf32>
    %205 = arith.subf %204, %203 : vector<8x1xf32>
    %cst_125 = arith.constant 1.280000e+02 : f32
    %206 = vector.broadcast %cst_125 : f32 to vector<8x1xf32>
    %207 = arith.divf %205, %206 : vector<8x1xf32>
    %cst_126 = arith.constant 0.899999976 : f32
    %208 = vector.broadcast %cst_126 : f32 to vector<8x1xf32>
    %209 = arith.mulf %208, %201 : vector<8x1xf32>
    %cst_127 = arith.constant 1.000000e-01 : f32
    %210 = vector.broadcast %cst_127 : f32 to vector<8x1xf32>
    %211 = arith.mulf %210, %207 : vector<8x1xf32>
    %212 = arith.addf %209, %211 : vector<8x1xf32>
    %cst_128 = arith.constant dense<0.000000e+00> : vector<1xf32>
    %213 = vector.multi_reduction <add>, %212, %cst_128 [0] : vector<8x1xf32> to vector<1xf32>
    %214 = vector.shape_cast %213 : vector<1xf32> to vector<1x1xf32>
    %c0_129 = arith.constant 0 : index
    %c0_130 = arith.constant 0 : index
    %c0_131 = arith.constant 0 : index
    %215 = vector.load %arg16[%c0_129, %c0_130, %c0_131] : memref<1x1x1xf32, #tpu.memory_space<vmem>>, vector<1x1x1xf32>
    %216 = vector.shape_cast %215 : vector<1x1x1xf32> to vector<1x1xf32>
    %217 = vector.shape_cast %214 : vector<1x1xf32> to vector<1x1x1xf32>
    tpu.vector_store %arg16[%c0_129, %c0_130, %c0_131], %217 {strides = array<i32>} : memref<1x1x1xf32, #tpu.memory_space<vmem>>, vector<1x1x1xf32>,
    return
  }
  func.func @transform_0(%arg0: i32) -> (i32, i32, i32) {
    %c0_i32 = arith.constant 0 : i32
    %c0_i32_0 = arith.constant 0 : i32
    %c0_i32_1 = arith.constant 0 : i32
    return %arg0, %c0_i32, %c0_i32_0 : i32, i32, i32
  }
  func.func @transform_1(%arg0: i32) -> (i32, i32, i32) {
    %c0_i32 = arith.constant 0 : i32
    %c0_i32_0 = arith.constant 0 : i32
    %c0_i32_1 = arith.constant 0 : i32
    return %arg0, %c0_i32, %c0_i32_0 : i32, i32, i32
  }
  func.func @transform_2(%arg0: i32) -> (i32, i32, i32) {
    %c0_i32 = arith.constant 0 : i32
    %c0_i32_0 = arith.constant 0 : i32
    %c0_i32_1 = arith.constant 0 : i32
    return %arg0, %c0_i32, %c0_i32_0 : i32, i32, i32
  }
  func.func @transform_3(%arg0: i32) -> (i32, i32, i32) {
    %c0_i32 = arith.constant 0 : i32
    %c0_i32_0 = arith.constant 0 : i32
    %c0_i32_1 = arith.constant 0 : i32
    return %arg0, %c0_i32, %c0_i32_0 : i32, i32, i32
  }
  func.func @transform_4(%arg0: i32) -> (i32, i32, i32) {
    %c0_i32 = arith.constant 0 : i32
    %c0_i32_0 = arith.constant 0 : i32
    %c0_i32_1 = arith.constant 0 : i32
    return %arg0, %c0_i32, %c0_i32_0 : i32, i32, i32
  }
  func.func @transform_5(%arg0: i32) -> (i32, i32, i32) {
    %c0_i32 = arith.constant 0 : i32
    %c0_i32_0 = arith.constant 0 : i32
    %c0_i32_1 = arith.constant 0 : i32
    %c0_i32_2 = arith.constant 0 : i32
    return %c0_i32, %c0_i32_0, %c0_i32_1 : i32, i32, i32
  }
  func.func @transform_6(%arg0: i32) -> (i32, i32, i32) {
    %c0_i32 = arith.constant 0 : i32
    %c0_i32_0 = arith.constant 0 : i32
    %c0_i32_1 = arith.constant 0 : i32
    %c0_i32_2 = arith.constant 0 : i32
    return %c0_i32, %c0_i32_0, %c0_i32_1 : i32, i32, i32
  }
  func.func @transform_7(%arg0: i32) -> (i32, i32, i32) {
    %c0_i32 = arith.constant 0 : i32
    %c0_i32_0 = arith.constant 0 : i32
    %c0_i32_1 = arith.constant 0 : i32
    %c0_i32_2 = arith.constant 0 : i32
    return %c0_i32, %c0_i32_0, %c0_i32_1 : i32, i32, i32
  }
  func.func @transform_8(%arg0: i32) -> (i32, i32, i32) {
    %c0_i32 = arith.constant 0 : i32
    %c0_i32_0 = arith.constant 0 : i32
    %c0_i32_1 = arith.constant 0 : i32
    %c0_i32_2 = arith.constant 0 : i32
    return %c0_i32, %c0_i32_0, %c0_i32_1 : i32, i32, i32
  }
  func.func @transform_9(%arg0: i32) -> (i32, i32) {
    %c0_i32 = arith.constant 0 : i32
    %c0_i32_0 = arith.constant 0 : i32
    %c0_i32_1 = arith.constant 0 : i32
    return %c0_i32, %c0_i32_0 : i32, i32
  }
  func.func @transform_10(%arg0: i32) -> (i32, i32) {
    %c0_i32 = arith.constant 0 : i32
    %c0_i32_0 = arith.constant 0 : i32
    %c0_i32_1 = arith.constant 0 : i32
    return %c0_i32, %c0_i32_0 : i32, i32
  }
  func.func @transform_11(%arg0: i32) -> (i32, i32) {
    %c0_i32 = arith.constant 0 : i32
    %c0_i32_0 = arith.constant 0 : i32
    %c0_i32_1 = arith.constant 0 : i32
    return %c0_i32, %c0_i32_0 : i32, i32
  }
  func.func @transform_12(%arg0: i32) -> (i32, i32) {
    %c0_i32 = arith.constant 0 : i32
    %c0_i32_0 = arith.constant 0 : i32
    %c0_i32_1 = arith.constant 0 : i32
    return %c0_i32, %c0_i32_0 : i32, i32
  }
  func.func @transform_13(%arg0: i32) -> (i32, i32, i32) {
    %c0_i32 = arith.constant 0 : i32
    %c0_i32_0 = arith.constant 0 : i32
    %c0_i32_1 = arith.constant 0 : i32
    return %arg0, %c0_i32, %c0_i32_0 : i32, i32, i32
  }
  func.func @transform_14(%arg0: i32) -> (i32, i32, i32) {
    %c0_i32 = arith.constant 0 : i32
    %c0_i32_0 = arith.constant 0 : i32
    %c0_i32_1 = arith.constant 0 : i32
    return %arg0, %c0_i32, %c0_i32_0 : i32, i32, i32
  }
  func.func @transform_15(%arg0: i32) -> (i32, i32, i32) {
    %c0_i32 = arith.constant 0 : i32
    %c0_i32_0 = arith.constant 0 : i32
    %c0_i32_1 = arith.constant 0 : i32
    return %arg0, %c0_i32, %c0_i32_0 : i32, i32, i32
  }
}

</mosaic_0001>

<bundles_post_ra>
// kernel: bart_seq2seq_forward.1
= control target key start
LH: loop header
LB: loop body
LE: loop exit
PB: predicated region body
PF: predicated region fallthrough
CT: control target
= control target key end

     0   :  { %s4407_s0 = inlined_call_operand.vmem [shape: s32[2,1,8], index: 0, kind: input, shape index: {}]   ;;  %s4408_s1 = inlined_call_operand.vmem [shape: s32[2,8,1], index: 1, kind: input, shape index: {}]   ;;  %s4409_s2 = inlined_call_operand.vmem [shape: f32[2,8,32], index: 2, kind: input, shape index: {}]   ;;  %s4410_s3 = inlined_call_operand.vmem [shape: f32[2,8,32], index: 3, kind: input, shape index: {}]   ;;  %s4411_s4 = inlined_call_operand.vmem [shape: f32[2,1,8], index: 4, kind: input, shape index: {}]   ;;  %s4412_s5 = inlined_call_operand.vmem [shape: f32[4,32,8], index: 5, kind: input, shape index: {}]   ;;  %s4413_s6 = inlined_call_operand.vmem [shape: f32[4,32,8], index: 6, kind: input, shape index: {}]   ;;  %s4414_s7 = inlined_call_operand.vmem [shape: f32[4,32,8], index: 7, kind: input, shape index: {}]   ;;  %s4415_s8 = inlined_call_operand.vmem [shape: f32[4,8,32], index: 8, kind: input, shape index: {}]   ;;  %s4416_s9 = inlined_call_operand.vmem [shape: f32[32,128], index: 9, kind: input, shape index: {}]   ;;  %s4417_s10 = inlined_call_operand.vmem [shape: f32[1,128], index: 10, kind: input, shape index: {}]   ;;  %s4418_s11 = inlined_call_operand.vmem [shape: f32[1,128], index: 11, kind: input, shape index: {}]   ;;  %s4419_s12 = inlined_call_operand.<no memory space> [shape: f32[1,1], index: 12, kind: input, shape index: {}]   ;;  %s4420_s13 = inlined_call_operand.hbm [shape: f32[2,8,128], index: 13, kind: output, shape index: {0}]   ;;  %s4421_s14 = inlined_call_operand.hbm [shape: f32[2,8,8], index: 14, kind: output, shape index: {1}]   ;;  %s4422_s15 = inlined_call_operand.vmem [shape: f32[2,1,1], index: 15, kind: output, shape index: {2}]  }
   0x1   :  { %4426 = sst [smem:[#allocation11_spill]] %s4407_s0 }
   0x2   :  { %4427 = sst [smem:[#allocation12_spill]] %s4408_s1 }
   0x3   :  { %4428 = sst [smem:[#allocation13_spill]] %s4409_s2 }
   0x4   :  { %4429 = sst [smem:[#allocation14_spill]] %s4410_s3 }
   0x5   :  { %4430 = sst [smem:[#allocation15_spill]] %s4411_s4 }
   0x6   :  { %4431 = sst [smem:[#allocation16_spill]] %s4412_s5 }
   0x7   :  { %4432 = sst [smem:[#allocation17_spill]] %s4413_s6 }
   0x8   :  { %21 = sst [smem:[#allocation2]] %s4419_s12 }
   0x9   :  { %22 = vsyncpa [#allocation4], 0 }
   0xa   :  { %24 = vsyncpa [#allocation4 + $0x1], 0 }
   0xb   :  { %25 = vsyncpa [#allocation6], 0 }
   0xc   :  { %27 = vsyncpa [#allocation6 + $0x1], 0  ;;  %s3827_s20 = smov 0   ;;  %s3829_s21 = smov 0  }
   0xd   :  { %s3831_s22 = smov 0   ;;  %s3833_s23 = smov 0  }
   0xe LB: > { %4433 = sst [smem:[#allocation9_spill]] %s3732_s22  ;;  %s3848_s12 = sadd.s32 4294967295, %s3736_s23   ;;  %s3736_s23 = sphi %s3833_s23, %s4452_s23   ;;  %s3732_s22 = sphi %s3831_s22, %s4449_s22   ;;  %s3728_s21 = sphi %s3829_s21, %s4451_s21   ;;  %s3724_s20 = sphi %s3827_s20, %s4450_s20  }
   0xf   : > { %s2980_s24 = sadd.s32 4294967294, %s3736_s23   ;;  %s3852_s25 = sadd.s32 1, %s3736_s23  }
  0x10   : > { %s338_s26 = sadd.s32 1, %s3732_s22  ;;  %s335_s27 = ssub.s32 %s3736_s23, %s3852_s25 }
  0x11   : > { %p348_p0 = scmp.ne.s32.totalorder %s3732_s22, %s3728_s21  ;;  %p336_p1 = scmp.eq.s32.totalorder %s335_s27, 0 }
  0x12   : > { %p349_p2 = scmp.eq.s32.totalorder %s3848_s12, 1  ;;  %p354_p3 = scmp.ne.s32.totalorder %s3728_s21, %s3724_s20 }
  0x13   : > { %p355_p4 = scmp.eq.s32.totalorder %s2980_s24, 1  ;;  %p2983_p7 = scmp.ge.s32.totalorder %s3736_s23, 1 }
  0x14   : > { %s3863_s28 = scalar_select %p336_p1, %s3732_s22, %s338_s26  }
  0x15   : > { %p3865_p5 = por %p349_p2, %p348_p0  ;;  %p3869_p6 = por %p355_p4, %p354_p3 }
  0x16   : > { %4434 = sst [smem:[#allocation10_spill]] %s3863_s28  ;;  %p482_p8 = scmp.lt.s32.totalorder %s3736_s23, 3 }
  0x18   : > { %p483_p9 = pnand %p2983_p7, %p482_p8 }
  0x19   : > { %s4437_s5 = sld [smem:[#allocation16_spill]] (!%p483_p9)  ;;  %v3738_v3 = vmov (!%p483_p9), 0.0|0.0   ;;  %vm3739_vm0 = vmmov (!%p483_p9), 0   ;;  %v3740_v6 = vmov (!%p483_p9), 0.0   ;;  %p551_p10 = scmp.lt.s32.totalorder (!%p483_p9), %s3848_s12, 1  ;;  %vm581_vm1 = vcmask (!%p483_p9), 261120  }
  0x1a   : > { %486 = sbr.rel (%p483_p9) target bundleno = 4792 (0x12b8), region = 72  ;;  %3445 = vmatprep.subr.bf16.mxu1 (!%p483_p9), %v3738_v3  ;;  %3215 = vmatprep.mubr.msk.f32.mxu1 (!%p483_p9), %vm3739_vm0, %v3740_v6  ;;  %s4438_s6 = sld [smem:[#allocation17_spill]] (!%p483_p9)  ;;  %v732_v15 = vld [vmem:[%s4414_s7] sm:$0xff] (!%p483_p9)  ;;  %v733_v16 = vld [vmem:[%s4414_s7 + $0x8] sm:$0xff] (!%p483_p9)  ;;  %v734_v19 = vld [vmem:[%s4414_s7 + $0x10] sm:$0xff] (!%p483_p9)  ;;  %vm806_vm2 = vcmask (!%p483_p9), 64512   ;;  %v885_v28 = vlaneseq (!%p483_p9) }
  0x1b   : > { %3250 = vmatprep.subr.mxu0 (!%p483_p9), %v3740_v6  ;;  %3252 = vmatprep.mubr.msk.f32.mxu0 (!%p483_p9), %vm3739_vm0, %v3740_v6  ;;  %s4439_s2 = sld [smem:[#allocation13_spill]] (!%p483_p9)  ;;  %s4440_s3 = sld [smem:[#allocation14_spill]] (!%p483_p9)  ;;  %v3458_v18 = vpack.c.bf16 (!%p483_p9), %v733_v16, %v732_v15  ;;  %v735_v20 = vld [vmem:[%s4414_s7 + $0x18] sm:$0xff] (!%p483_p9)  ;;  %v975_v60 = vld [vmem:[%s4415_s8] sm:$0xff] (!%p483_p9)  ;;  %vm4247_vm5 = vmpackc.low (!%p483_p9), %vm806_vm2, %vm806_vm2 }
  0x1c   : > { %v3461_v21 = vpack.c.bf16 (!%p483_p9), %v735_v20, %v734_v19  ;;  %s4441_s4 = sld [smem:[#allocation15_spill]] (!%p483_p9)  ;;  %v3965_v31 = vshrl.u32 (!%p483_p9), %v885_v28, 7  ;;  %3251 = vmatpush3.msra.mxu0 (!%p483_p9), %v975_v60  ;;  %s4193_s18 = sand.u32 (!%p483_p9), 1, %s3728_s21  }
  0x1d   : > { %3288 = vmatprep.subr.mxu0 (!%p483_p9), %v3740_v6  ;;  %s4442_s0 = sld [smem:[#allocation11_spill]] (!%p483_p9)  ;;  %s4445_s17 = sshll.u32 (!%p483_p9), %s4193_s18, 3 }
  0x1e   : > { %v887_v33 = vsub.s32 (!%p483_p9), 0, %v3965_v31  ;;  %s4446_s1 = sld [smem:[#allocation12_spill]] (!%p483_p9) }
  0x1f   : > { %v577_v0 = vld [vmem:[%s4437_s5] sm:$0xff] (!%p483_p9)  ;;  %v578_v1 = vld [vmem:[%s4437_s5 + $0x8] sm:$0xff] (!%p483_p9)  ;;  %v579_v2 = vld [vmem:[%s4437_s5 + $0x10] sm:$0xff] (!%p483_p9) }
  0x20   : > { %v3446_v4 = vpack.c.bf16 (!%p483_p9), %v578_v1, %v577_v0  ;;  %v580_v5 = vld [vmem:[%s4437_s5 + $0x18] sm:$0xff] (!%p483_p9)  ;;  %v655_v8 = vld [vmem:[%s4438_s6] sm:$0xff] (!%p483_p9)  ;;  %v656_v9 = vld [vmem:[%s4438_s6 + $0x8] sm:$0xff] (!%p483_p9) }
  0x21   : > { %v3449_v7 = vpack.c.bf16 %v580_v5, %v579_v2  ;;  %s3895_s16 = scalar_select %p551_p10, %s3848_s12, 1  ;;  %v3452_v11 = vpack.c.bf16 %v656_v9, %v655_v8  ;;  %v657_v12 = vld [vmem:[%s4438_s6 + $0x10] sm:$0xff]  ;;  %v658_v13 = vld [vmem:[%s4438_s6 + $0x18] sm:$0xff]  ;;  %v2997_v46 = vld [vmem:[%s4437_s5 + $0x20] sm:$0xff] }
  0x22   : > { %3447 = vmatpush3.bf16.msra.mxu1 %v3446_v4  ;;  %v3455_v14 = vpack.c.bf16 %v658_v13, %v657_v12  ;;  %v2998_v47 = vld [vmem:[%s4437_s5 + $0x28] sm:$0xff]  ;;  %v2999_v51 = vld [vmem:[%s4437_s5 + $0x30] sm:$0xff]  ;;  %v3000_v52 = vld [vmem:[%s4437_s5 + $0x38] sm:$0xff] }
  0x23   : > { %3448 = vmatprep.subr.bf16.mxu1 %v3738_v3  ;;  %s3905_s24 = sshll.u32 %s3895_s16, 3  ;;  %s568_s19 = scalar_lea.vmem %s4441_s4, %s3895_s16  ;;  %v3464_v49 = vpack.c.bf16 %v2998_v47, %v2997_v46  ;;  %v3467_v53 = vpack.c.bf16 %v3000_v52, %v2999_v51  ;;  %v3002_v54 = vld [vmem:[%s4438_s6 + $0x20] sm:$0xff]  ;;  %v3003_v55 = vld [vmem:[%s4438_s6 + $0x28] sm:$0xff]  ;;  %v3004_v57 = vld [vmem:[%s4438_s6 + $0x30] sm:$0xff] }
  0x24   : > { %s561_s22 = scalar_lea.vmem %s4439_s2, %s3905_s24  ;;  %s565_s27 = scalar_lea.vmem %s4440_s3, %s3905_s24  ;;  %v574_v29 = vld [vmem:[%s568_s19] sm:$0x1]  ;;  %v3470_v56 = vpack.c.bf16 %v3003_v55, %v3002_v54  ;;  %v3005_v58 = vld [vmem:[%s4438_s6 + $0x38] sm:$0xff]  ;;  %v3008_v5 = vld [vmem:[%s4414_s7 + $0x28] sm:$0xff] }
  0x25   : > { %v3911_v10 = vld [vmem:[%s561_s22] sm:$0xff]  ;;  %v2989_v30 = vadd.f32 -1.0, %v574_v29  ;;  %v3473_v59 = vpack.c.bf16 %v3005_v58, %v3004_v57  ;;  %v3010_v9 = vld [vmem:[%s4414_s7 + $0x38] sm:$0xff]  ;;  %v3018_v19 = vld [vmem:[%s4437_s5 + $0x48] sm:$0xff]  ;;  %s4424_s19 = sshll.u32 %s4193_s18, 3  ;;  %s553_s3 = scalar_lea.vmem %s4442_s0, %s3895_s16 }
  0x26   : > { %3450 = vmatpush3.bf16.msra.mxu1 %v3449_v7  ;;  %v3935_v17 = vld [vmem:[%s565_s27] sm:$0xff]  ;;  %v3009_v7 = vld [vmem:[%s4414_s7 + $0x30] sm:$0xff]  ;;  %v3028_v51 = vld [vmem:[%s4414_s7 + $0x48] sm:$0xff]  ;;  %s4205_s28 = scalar_lea.vmem [#allocation5], %s4424_s19  ;;  %s2534_s2 = sld [smem:[#allocation2]] }
  0x27   : > { %3451 = vmatprep.subr.bf16.mxu1 %v3738_v3  ;;  %v576_v32 = vmul.f32 1e+09, %v2989_v30  ;;  %v3007_v4 = vld [vmem:[%s4414_s7 + $0x20] sm:$0xff]  ;;  %v3029_v52 = vld [vmem:[%s4414_s7 + $0x50] sm:$0xff]  ;;  %v3030_v54 = vld [vmem:[%s4414_s7 + $0x58] sm:$0xff]  ;;  %s4324_s22 = scalar_lea.vmem [#allocation3], %s4445_s17  ;;  %s557_s26 = scalar_lea.vmem %s4446_s1, %s3905_s24 }
  0x28   : > { %v3476_v8 = vpack.c.bf16 %v3008_v5, %v3007_v4  ;;  %v3022_v30 = vld [vmem:[%s4438_s6 + $0x40] sm:$0xff]  ;;  %v3497_v55 = vpack.c.bf16 %v3030_v54, %v3029_v52  ;;  %v3035_v5 = vld [vmem:[%s4415_s8 + $0x10] sm:$0xff]  ;;  %v3055_v52 = vld [vmem:[%s4415_s8 + $0x18] sm:$0xff]  ;;  %s4425_s24 = sshll.u32 %s3848_s12, 7  ;;  %s2812_s27 = sshll.u32 %s4324_s22, 4  ;;  %s2813_s27 = int_to_ptr.vmem [resolvable:$true] %s2812_s27 }
  0x29   : > { %3216 = vmatmul.mubr.msk.f32.vlgmr.msra.gmra.mrb[0].mxu1 %vm581_vm1, %v3911_v10  ;;  %v3968_v34 = vrot.slane %v576_v32, %v887_v33  ;;  %v3023_v32 = vld [vmem:[%s4438_s6 + $0x48] sm:$0xff]  ;;  %s2791_s19 = scalar_lea.sflag [#allocation4], %s4193_s18  ;;  %s3742_s0 = smov [#allocation3]  }
  0x2a   : > { %3453 = vmatpush3.bf16.msra.mxu1 %v3452_v11  ;;  %3226 = vmatprep.mubr.msk.f32.mxu1 %vm3739_vm0, %v3740_v6  ;;  %v3479_v11 = vpack.c.bf16 %v3010_v9, %v3009_v7  ;;  %v3488_v33 = vpack.c.bf16 %v3023_v32, %v3022_v30  ;;  %v3047_v32 = vld [vmem:[%s4414_s7 + $0x60] sm:$0xff]  ;;  %v2441_v54 = vld [vmem:[%s4416_s9 + $0x8] sm:$0xff]  ;;  %s3646_s1 = sshll.u32 %s3742_s0, 4  ;;  %s3647_s1 = int_to_ptr.vmem [resolvable:$false] %s3646_s1 }
  0x2b   : > { %3454 = vmatprep.subr.bf16.mxu1 %v3738_v3  ;;  %s3648_s4 = scalar_lea.vmem %s3647_s1, 256  ;;  %p3649_p0 = scmp.lt.s32.totalorder %s2813_s27, %s3647_s1 }
  0x2e   : > { %3456 = vmatpush3.bf16.msra.mxu1 %v3455_v14 }
  0x2f   : > { %3457 = vmatprep.subr.bf16.mxu1 %v3738_v3 }
  0x31   : > { %3227 = vmatmul.mubr.msk.f32.vlgmr.msra.gmra.mrb[2].mxu1 %vm581_vm1, %v3935_v17 }
  0x32   : > { %3459 = vmatpush3.bf16.msra.mxu1 %v3458_v18  ;;  %3237 = vmatprep.mubr.msk.f32.mxu1 %vm3739_vm0, %v3740_v6  ;;  %v3017_v18 = vld [vmem:[%s4437_s5 + $0x40] sm:$0xff] }
  0x33   : > { %3460 = vmatprep.subr.bf16.mxu1 %v3738_v3  ;;  %v3482_v20 = vpack.c.bf16 %v3018_v19, %v3017_v18  ;;  %v3042_v18 = vld [vmem:[%s4438_s6 + $0x60] sm:$0xff]  ;;  %v3043_v19 = vld [vmem:[%s4438_s6 + $0x68] sm:$0xff] }
  0x36   : > { %3462 = vmatpush3.bf16.msra.mxu1 %v3461_v21 }
  0x37   : > { %3240 = vmatprep.subr.mxu1 %v3740_v6 }
  0x39   : > { %3238 = vmatmul.mubr.msk.f32.vlgmr.msra.gmra.mrb[4].mxu1 %vm581_vm1, %v3935_v17 }
  0x3a   : > { %3242 = vmatprep.mubr.msk.f32.mxu1 %vm3739_vm0, %v3740_v6 }
  0xfc   : > { %v651_v22 = vpop.f32.mrb[0].mxu1 }
  0xfd   : > { %v3217_v23 = vpop.f32.mrb[1].mxu1 }
 0x104   : > { %v728_v24 = vpop.f32.mrb[2].mxu1 }
 0x105   : > { %v3228_v25 = vpop.f32.mrb[3].mxu1  ;;  %3241 = vmatpush3.xpose.msk.msra.mxu1 %vm806_vm2, %v728_v24 }
 0x106   : > { %3245 = vmatprep.subr.mxu1 %v3740_v6 }
 0x108   : > { %3243 = vmatmul.mubr.msk.f32.vlgmr.msra.gmra.mrb[6].mxu1 %vm806_vm2, %v651_v22 }
 0x109   : > { %3247 = vmatprep.mubr.msk.f32.mxu1 %vm3739_vm0, %v3740_v6 }
 0x10c   : > { %v802_v26 = vpop.f32.mrb[4].mxu1 }
 0x10d   : > { %v3239_v27 = vpop.f32.mrb[5].mxu1  ;;  %3246 = vmatpush3.msra.mxu1 %v802_v26  ;;  %v3019_v26 = vld [vmem:[%s4437_s5 + $0x50] sm:$0xff] }
 0x10e   : > { %3463 = vmatprep.subr.bf16.mxu1 %v3738_v3  ;;  %v3020_v27 = vld [vmem:[%s4437_s5 + $0x58] sm:$0xff] }
 0x10f   : > { %v3485_v29 = vpack.c.bf16 %v3020_v27, %v3019_v26 }
 0x1db   : > { %v879_v35 = vpop.f32.mrb[6].mxu1 }
 0x1dc   : > { %v883_v36 = vmul.f32 0.35355338, %v879_v35  ;;  %v3244_v37 = vpop.f32.mrb[7].mxu1  ;;  %v3024_v35 = vld [vmem:[%s4438_s6 + $0x50] sm:$0xff] }
 0x1de   : > { %v890_v38 = vadd.f32 %v3968_v34, %v883_v36  ;;  %v3025_v36 = vld [vmem:[%s4438_s6 + $0x58] sm:$0xff] }
 0x1df   : > { %v3491_v37 = vpack.c.bf16 %v3025_v36, %v3024_v35  ;;  %v3049_v35 = vld [vmem:[%s4414_s7 + $0x70] sm:$0xff] }
 0x1e0   : > { %v891_v39 = vsel %vm806_vm2, %v890_v38, -inf }
 0x1e1   : > { %892 = vmax.xlane.f32.xlu0 %v891_v39 }
 0x26e   : > { %v893_v40 = vpop.xlane.xlu0 %892 }
 0x26f   : > { %v894_v41 = vsub.f32 %v890_v38, %v893_v40 }
 0x271   : > { %v895_v42 = vmul.f32 1.442695, %v894_v41 }
 0x273   : > { %3612 = vpow2.f32 %v895_v42 }
 0x27d   : > { %v3613_v43 = vpop.eup %3612 }
 0x27e   : > { %v897_v44 = vsel %vm806_vm2, %v3613_v43, 0.0 }
 0x27f   : > { %898 = vadd.xlane.f32.xlu0 %v897_v44 }
 0x30c   : > { %v899_v45 = vpop.xlane.xlu0 %898 }
 0x30d   : > { %3614 = vrcp.f32 %v899_v45 }
 0x317   : > { %v3615_v48 = vpop.eup %3614 }
 0x318   : > { %v901_v50 = vmul.f32 %v3615_v48, %v3613_v43  ;;  %v3015_v43 = vld [vmem:[%s4415_s8 + $0x8] sm:$0xff] }
 0x31a   : > { %3248 = vmatmul.mubr.msk.f32.vlgmr.msra.gmra.mrb[8].mxu1 %vm806_vm2, %v901_v50  ;;  %v3027_v50 = vld [vmem:[%s4414_s7 + $0x40] sm:$0xff] }
 0x31b   : > { %3465 = vmatpush3.bf16.msra.mxu1 %v3464_v49  ;;  %3263 = vmatprep.mubr.msk.f32.mxu1 %vm3739_vm0, %v3740_v6 }
 0x31c   : > { %3466 = vmatprep.subr.bf16.mxu1 %v3738_v3 }
 0x31f   : > { %3468 = vmatpush3.bf16.msra.mxu1 %v3467_v53  ;;  %v3494_v53 = vpack.c.bf16 %v3028_v51, %v3027_v50 }
 0x320   : > { %3469 = vmatprep.subr.bf16.mxu1 %v3738_v3 }
 0x322   : > { %3264 = vmatmul.mubr.msk.f32.vlgmr.msra.gmra.mrb[10].mxu1 %vm581_vm1, %v3911_v10 }
 0x323   : > { %3471 = vmatpush3.bf16.msra.mxu1 %v3470_v56  ;;  %3274 = vmatprep.mubr.msk.f32.mxu1 %vm3739_vm0, %v3740_v6 }
 0x324   : > { %3472 = vmatprep.subr.bf16.mxu1 %v3738_v3 }
 0x327   : > { %3474 = vmatpush3.bf16.msra.mxu1 %v3473_v59 }
 0x328   : > { %3475 = vmatprep.subr.bf16.mxu1 %v3738_v3 }
 0x32a   : > { %3275 = vmatmul.mubr.msk.f32.vlgmr.msra.gmra.mrb[12].mxu1 %vm581_vm1, %v3935_v17 }
 0x32b   : > { %3285 = vmatprep.mubr.msk.f32.mxu1 %vm3739_vm0, %v3740_v6  ;;  %3477 = vmatpush3.bf16.msra.mxu1 %v3476_v8 }
 0x32c   : > { %3478 = vmatprep.subr.bf16.mxu1 %v3738_v3 }
 0x32f   : > { %3480 = vmatpush3.bf16.msra.mxu1 %v3479_v11  ;;  %v3037_v11 = vld [vmem:[%s4437_s5 + $0x60] sm:$0xff] }
 0x330   : > { %3481 = vmatprep.subr.bf16.mxu1 %v3738_v3 }
 0x332   : > { %3286 = vmatmul.mubr.msk.f32.vlgmr.msra.gmra.mrb[14].mxu1 %vm581_vm1, %v3935_v17 }
 0x333   : > { %3311 = vmatprep.mubr.msk.f32.mxu1 %vm3739_vm0, %v3740_v6  ;;  %3483 = vmatpush3.bf16.msra.mxu1 %v3482_v20  ;;  %v3506_v20 = vpack.c.bf16 %v3043_v19, %v3042_v18  ;;  %v2561_v18 = vadd.s32 48, %v3965_v31  ;;  %v2562_v19 = vadd.s32 56, %v3965_v31 }
 0x334   : > { %3484 = vmatprep.subr.bf16.mxu1 %v3738_v3 }
 0x337   : > { %3486 = vmatpush3.bf16.msra.mxu1 %v3485_v29 }
 0x338   : > { %3487 = vmatprep.subr.bf16.mxu1 %v3738_v3 }
 0x33a   : > { %3312 = vmatmul.mubr.msk.f32.vlgmr.msra.gmra.mrb[16].mxu1 %vm581_vm1, %v3911_v10 }
 0x33b   : > { %3489 = vmatpush3.bf16.msra.mxu1 %v3488_v33  ;;  %3322 = vmatprep.mubr.msk.f32.mxu1 %vm3739_vm0, %v3740_v6  ;;  %v3048_v33 = vld [vmem:[%s4414_s7 + $0x68] sm:$0xff] }
 0x33c   : > { %3490 = vmatprep.subr.bf16.mxu1 %v3738_v3  ;;  %v3512_v36 = vpack.c.bf16 %v3048_v33, %v3047_v32  ;;  %v2563_v32 = vadd.s32 64, %v3965_v31  ;;  %v2564_v33 = vadd.s32 72, %v3965_v31 }
 0x33f   : > { %3492 = vmatpush3.bf16.msra.mxu1 %v3491_v37  ;;  %v3050_v37 = vld [vmem:[%s4414_s7 + $0x78] sm:$0xff] }
 0x340   : > { %3493 = vmatprep.subr.bf16.mxu1 %v3738_v3 }
 0x342   : > { %3323 = vmatmul.mubr.msk.f32.vlgmr.msra.gmra.mrb[18].mxu1 %vm581_vm1, %v3935_v17 }
 0x343   : > { %3333 = vmatprep.mubr.msk.f32.mxu1 %vm3739_vm0, %v3740_v6  ;;  %3495 = vmatpush3.bf16.msra.mxu1 %v3494_v53  ;;  %v2440_v53 = vld [vmem:[%s4416_s9] sm:$0xff] }
 0x344   : > { %3496 = vmatprep.subr.bf16.mxu1 %v3738_v3 }
 0x347   : > { %3498 = vmatpush3.bf16.msra.mxu1 %v3497_v55  ;;  %v3518_v55 = vpack.c.bf16 %v2441_v54, %v2440_v53  ;;  %v2535_v53 = vstv %s2534_s2 }
 0x348   : > { %3341 = vmatprep.subr.mxu1 %v3740_v6 }
 0x34a   : > { %3334 = vmatmul.mubr.msk.f32.vlgmr.msra.gmra.mrb[20].mxu1 %vm581_vm1, %v3935_v17 }
 0x34b   : > { %3343 = vmatprep.mubr.msk.f32.mxu1 %vm3739_vm0, %v3740_v6 }
 0x3ed   : > { %v971_v61 = vpop.f32.mrb[8].mxu1 }
 0x3ee   : > { %v3249_v62 = vpop.f32.mrb[9].mxu1  ;;  %3253 = vmatmul.mubr.msk.f32.vlgmr.msra.gmra.mrb[0].mxu0 %vm806_vm2, %v971_v61 }
 0x3ef   : > { %3290 = vmatprep.mubr.msk.f32.mxu0 %vm3739_vm0, %v3740_v6 }
 0x3f5   : > { %v1121_v63 = vpop.f32.mrb[10].mxu1 }
 0x3f6   : > { %v3265_v0 = vpop.f32.mrb[11].mxu1 }
 0x3fd   : > { %v1196_v1 = vpop.f32.mrb[12].mxu1 }
 0x3fe   : > { %v3276_v2 = vpop.f32.mrb[13].mxu1  ;;  %3289 = vmatpush3.xpose.msk.msra.mxu0 %vm806_vm2, %v1196_v1 }
 0x3ff   : > { %3293 = vmatprep.subr.mxu0 %v3740_v6 }
 0x401   : > { %3291 = vmatmul.mubr.msk.f32.vlgmr.msra.gmra.mrb[2].mxu0 %vm806_vm2, %v1121_v63 }
 0x402   : > { %3295 = vmatprep.mubr.msk.f32.mxu0 %vm3739_vm0, %v3740_v6 }
 0x405   : > { %v1271_v38 = vpop.f32.mrb[14].mxu1 }
 0x406   : > { %v3287_v39 = vpop.f32.mrb[15].mxu1  ;;  %3294 = vmatpush3.msra.mxu0 %v1271_v38  ;;  %v3515_v38 = vpack.c.bf16 %v3050_v37, %v3049_v35 }
 0x407   : > { %3298 = vmatprep.subr.mxu0 %v3740_v6 }
 0x40d   : > { %v1584_v44 = vpop.f32.mrb[16].mxu1 }
 0x40e   : > { %v3313_v45 = vpop.f32.mrb[17].mxu1 }
 0x415   : > { %v1659_v46 = vpop.f32.mrb[18].mxu1 }
 0x416   : > { %v3324_v47 = vpop.f32.mrb[19].mxu1 }
 0x41d   : > { %v1734_v2 = vpop.f32.mrb[20].mxu1 }
 0x41e   : > { %v3335_v4 = vpop.f32.mrb[21].mxu1  ;;  %3342 = vmatpush3.msra.mxu1 %v1734_v2  ;;  %v2557_v2 = vadd.s32 16, %v3965_v31 }
 0x41f   : > { %3499 = vmatprep.subr.bf16.mxu1 %v3738_v3  ;;  %v2558_v4 = vadd.s32 24, %v3965_v31 }
 0x4d4   : > { %v1347_v12 = vpop.f32.mrb[2].mxu0 }
 0x4d5   : > { %v1351_v13 = vmul.f32 0.35355338, %v1347_v12  ;;  %v3292_v14 = vpop.f32.mrb[3].mxu0  ;;  %v3038_v12 = vld [vmem:[%s4437_s5 + $0x68] sm:$0xff] }
 0x4d6   : > { %v3039_v14 = vld [vmem:[%s4437_s5 + $0x70] sm:$0xff] }
 0x4d7   : > { %v1352_v15 = vadd.f32 %v1351_v13, %v3968_v34  ;;  %v3500_v13 = vpack.c.bf16 %v3038_v12, %v3037_v11  ;;  %v2559_v12 = vadd.s32 32, %v3965_v31 }
 0x4d9   : > { %v1353_v16 = vsel %vm806_vm2, %v1352_v15, -inf }
 0x4da   : > { %1354 = vmax.xlane.f32.xlu1 %v1353_v16 }
 0x567   : > { %v1355_v21 = vpop.xlane.xlu1 %1354 }
 0x568   : > { %v1356_v22 = vsub.f32 %v1352_v15, %v1355_v21  ;;  %v3040_v15 = vld [vmem:[%s4437_s5 + $0x78] sm:$0xff]  ;;  %v3044_v21 = vld [vmem:[%s4438_s6 + $0x70] sm:$0xff] }
 0x569   : > { %v3503_v16 = vpack.c.bf16 %v3040_v15, %v3039_v14 }
 0x56a   : > { %v1357_v23 = vmul.f32 1.442695, %v1356_v22  ;;  %v3045_v22 = vld [vmem:[%s4438_s6 + $0x78] sm:$0xff] }
 0x56c   : > { %3616 = vpow2.f32 %v1357_v23 }
 0x576   : > { %v3617_v24 = vpop.eup %3616 }
 0x577   : > { %v1359_v25 = vsel %vm806_vm2, %v3617_v24, 0.0 }
 0x578   : > { %1360 = vadd.xlane.f32.xlu1 %v1359_v25  ;;  %v3509_v25 = vpack.c.bf16 %v3045_v22, %v3044_v21 }
 0x605   : > { %v1361_v40 = vpop.xlane.xlu1 %1360 }
 0x606   : > { %3618 = vrcp.f32 %v1361_v40 }
 0x610   : > { %v3619_v41 = vpop.eup %3618 }
 0x611   : > { %v1363_v42 = vmul.f32 %v3619_v41, %v3617_v24 }
 0x613   : > { %3296 = vmatmul.mubr.msk.f32.vlgmr.msra.gmra.mrb[4].mxu0 %vm806_vm2, %v1363_v42 }
 0x614   : > { %3299 = vmatpush3.msra.mxu0 %v3015_v43  ;;  %3300 = vmatprep.mubr.msk.f32.mxu0 %vm3739_vm0, %v3740_v6 }
 0x615   : > { %3336 = vmatprep.subr.mxu0 %v3740_v6 }
 0x6e6   : > { %v1433_v48 = vpop.f32.mrb[4].mxu0 }
 0x6e7   : > { %v3297_v49 = vpop.f32.mrb[5].mxu0  ;;  %3301 = vmatmul.mubr.msk.f32.vlgmr.msra.gmra.mrb[0].mxu0 %vm806_vm2, %v1433_v48 }
 0x6e8   : > { %3337 = vmatpush3.xpose.msk.msra.mxu0 %vm806_vm2, %v1659_v46  ;;  %3338 = vmatprep.mubr.msk.f32.mxu0 %vm3739_vm0, %v3740_v6 }
 0x6e9   : > { %3346 = vmatprep.subr.mxu0 %v3740_v6 }
 0x6eb   : > { %3339 = vmatmul.mubr.msk.f32.vlgmr.msra.gmra.mrb[6].mxu0 %vm806_vm2, %v1584_v44 }
 0x6ec   : > { %3348 = vmatprep.mubr.msk.f32.mxu0 %vm3739_vm0, %v3740_v6  ;;  %3347 = vmatpush3.msra.mxu0 %v3035_v5 }
 0x6ed   : > { %3505 = vmatprep.subr.bf16.mxu0 %v3738_v3 }
 0x7be   : > { %v1810_v56 = vpop.f32.mrb[6].mxu0 }
 0x7bf   : > { %v1814_v57 = vmul.f32 0.35355338, %v1810_v56  ;;  %v3340_v58 = vpop.f32.mrb[7].mxu0 }
 0x7c0   : > { %v2442_v58 = vld [vmem:[%s4416_s9 + $0x10] sm:$0xff] }
 0x7c1   : > { %v1815_v59 = vadd.f32 %v1814_v57, %v3968_v34 }
 0x7c3   : > { %v1816_v60 = vsel %vm806_vm2, %v1815_v59, -inf }
 0x7c4   : > { %1817 = vmax.xlane.f32.xlu0 %v1816_v60 }
 0x851   : > { %v1818_v61 = vpop.xlane.xlu0 %1817 }
 0x852   : > { %v1819_v62 = vsub.f32 %v1815_v59, %v1818_v61  ;;  %v2443_v59 = vld [vmem:[%s4416_s9 + $0x18] sm:$0xff] }
 0x853   : > { %v3521_v60 = vpack.c.bf16 %v2443_v59, %v2442_v58 }
 0x854   : > { %v1820_v63 = vmul.f32 1.442695, %v1819_v62 }
 0x856   : > { %3620 = vpow2.f32 %v1820_v63 }
 0x860   : > { %v3621_v0 = vpop.eup %3620 }
 0x861   : > { %v1822_v1 = vsel %vm806_vm2, %v3621_v0, 0.0 }
 0x862   : > { %1823 = vadd.xlane.f32.xlu1 %v1822_v1  ;;  %v2556_v1 = vadd.s32 8, %v3965_v31 }
 0x8ef   : > { %v1824_v7 = vpop.xlane.xlu1 %1823 }
 0x8f0   : > { %3622 = vrcp.f32 %v1824_v7 }
 0x8fa   : > { %v3623_v8 = vpop.eup %3622 }
 0x8fb   : > { %v1826_v9 = vmul.f32 %v3623_v8, %v3621_v0  ;;  %v4235_v0 = vld [vmem:[%s553_s3] ss:$0 sm:$0xff]  ;;  %s4340_s3 = scalar_lea.hbm %s4420_s13, %s4425_s24 }
 0x8fc   : > { %vm2576_vm3 = vcmp.eq.s32.totalorder %v3965_v31, %v4235_v0  ;;  %vm2577_vm4 = vcmp.eq.s32.totalorder %v2556_v1, %v4235_v0  ;;  %vm2578_vm6 = vcmp.eq.s32.totalorder %v2557_v2, %v4235_v0  ;;  %vm2579_vm7 = vcmp.eq.s32.totalorder %v2558_v4, %v4235_v0 }
 0x8fd   : > { %3344 = vmatmul.mubr.msk.f32.vlgmr.msra.gmra.mrb[22].mxu1 %vm806_vm2, %v1826_v9  ;;  %v3062_v5 = vsel %vm2577_vm4, 1.0, %v3740_v6  ;;  %v3063_v9 = vsel %vm2578_vm6, 1.0, %v3740_v6  ;;  %v3064_v11 = vsel %vm2579_vm7, 1.0, %v3740_v6  ;;  %vm2580_vm8 = vcmp.eq.s32.totalorder %v2559_v12, %v4235_v0  ;;  %v2761_v12 = vld [vmem:[%s557_s26] sm:$0xff]  ;;  %s3642_s26 = scalar_lea.vmem %s2813_s27, 128 }
 0x8fe   : > { %3359 = vmatprep.mubr.msk.f32.mxu1 %vm3739_vm0, %v3740_v6  ;;  %3501 = vmatpush3.bf16.msra.mxu1 %v3500_v13  ;;  %v2560_v13 = vadd.s32 40, %v3965_v31  ;;  %v3528_v14 = vpack.c.bf16 %v3064_v11, %v3063_v9  ;;  %v3065_v15 = vsel %vm2580_vm8, 1.0, %v3740_v6  ;;  %vm2582_vm10 = vcmp.eq.s32.totalorder %v2561_v18, %v4235_v0  ;;  %p3643_p11 = scmp.ne.s32.totalorder %s2813_s27, %s3642_s26  ;;  %p3650_p1 = scmp.lt.s32.totalorder %s3648_s4, %s3642_s26 }
 0x8ff   : > { %3502 = vmatprep.subr.bf16.mxu1 %v3738_v3  ;;  %vm2583_vm11 = vcmp.eq.s32.totalorder %v2562_v19, %v4235_v0  ;;  %v3067_v21 = vsel %vm2582_vm10, 1.0, %v3740_v6  ;;  %vm2584_vm12 = vcmp.eq.s32.totalorder %v2563_v32, %v4235_v0  ;;  %vm2585_vm13 = vcmp.eq.s32.totalorder %v2564_v33, %v4235_v0 }
 0x900   : > { %vm2581_vm9 = vcmp.eq.s32.totalorder %v2560_v13, %v4235_v0  ;;  %v3068_v22 = vsel %vm2583_vm11, 1.0, %v3740_v6  ;;  %v3069_v35 = vsel %vm2584_vm12, 1.0, %v3740_v6  ;;  %v2763_v19 = vand.u32 127, %v885_v28  ;;  %p3644_p12 = pnand %p3643_p11, %p3865_p5  ;;  %p3651_p2 = por %p3650_p1, %p3649_p0 }
 0x902   : > { %3504 = vmatpush3.bf16.msra.mxu1 %v3503_v16  ;;  %v3066_v16 = vsel %vm2581_vm9, 1.0, %v3740_v6  ;;  %p3645_p13 = pneg %p3644_p12 }
 0x903   : > { %3511 = vmatprep.subr.bf16.mxu1 %v3738_v3 }
 0x904   : > { %p3652_p3 = pnand %p3651_p2, %p3645_p13 }
 0x905   : > { %3360 = vmatmul.mubr.msk.f32.vlgmr.msra.gmra.mrb[24].mxu1 %vm581_vm1, %v3911_v10 }
 0x906   : > { %3381 = vmatprep.mubr.msk.f32.mxu1 %vm3739_vm0, %v3740_v6  ;;  %3513 = vmatpush3.bf16.msra.mxu1 %v3512_v36  ;;  %v3070_v36 = vsel %vm2585_vm13, 1.0, %v3740_v6 }
 0x907   : > { %3514 = vmatprep.subr.bf16.mxu1 %v3738_v3  ;;  %v3540_v37 = vpack.c.bf16 %v3070_v36, %v3069_v35 }
 0x90a   : > { %3516 = vmatpush3.bf16.msra.mxu1 %v3515_v38  ;;  %v2565_v38 = vadd.s32 80, %v3965_v31 }
 0x90b   : > { %3517 = vmatprep.subr.bf16.mxu1 %v3738_v3 }
 0x90c   : > { %vm2586_vm14 = vcmp.eq.s32.totalorder %v2565_v38, %v4235_v0 }
 0x90d   : > { %3382 = vmatmul.mubr.msk.f32.vlgmr.msra.gmra.mrb[26].mxu1 %vm581_vm1, %v3935_v17 }
 0x90e   : > { %3407 = vmatprep.mubr.msk.f32.mxu1 %vm3739_vm0, %v3740_v6  ;;  %3519 = vmatpush3.bf16.msra.mxu1 %v3518_v55 }
 0x90f   : > { %3520 = vmatprep.subr.bf16.mxu1 %v3738_v3 }
 0x912   : > { %3522 = vmatpush3.bf16.msra.mxu1 %v3521_v60 }
 0x9d0   : > { %v1896_v23 = vpop.f32.mrb[22].mxu1 }
 0x9d1   : > { %v3345_v24 = vpop.f32.mrb[23].mxu1  ;;  %3349 = vmatmul.mubr.msk.f32.vlgmr.msra.gmra.mrb[0].mxu0 %vm806_vm2, %v1896_v23  ;;  %v3536_v23 = vpack.c.bf16 %v3068_v22, %v3067_v21 }
 0x9d2   : > { %3507 = vmatpush3.bf16.msra.mxu0 %v3506_v20  ;;  %3370 = vmatprep.mubr.msk.f32.mxu0 %vm3739_vm0, %v3740_v6  ;;  %v3532_v20 = vpack.c.bf16 %v3066_v16, %v3065_v15  ;;  %v3057_v24 = vld [vmem:[%s4417_s10] ss:$0 sm:$0xff] }
 0x9d3   : > { %3508 = vmatprep.subr.bf16.mxu0 %v3738_v3 }
 0x9d6   : > { %3510 = vmatpush3.bf16.msra.mxu0 %v3509_v25 }
 0x9d7   : > { %3384 = vmatprep.subr.mxu0 %v3740_v6 }
 0x9d8   : > { %v2047_v26 = vpop.f32.mrb[24].mxu1 }
 0x9d9   : > { %3371 = vmatmul.mubr.msk.f32.vlgmr.msra.gmra.mrb[8].mxu0 %vm581_vm1, %v3935_v17  ;;  %v3361_v27 = vpop.f32.mrb[25].mxu1 }
 0x9da   : > { %3386 = vmatprep.mubr.msk.f32.mxu0 %vm3739_vm0, %v3740_v6 }
 0x9e0   : > { %v2197_v17 = vpop.f32.mrb[26].mxu1 }
 0x9e1   : > { %v3383_v49 = vpop.f32.mrb[27].mxu1 }
 0xaac   : > { %v2122_v29 = vpop.f32.mrb[8].mxu0 }
 0xaad   : > { %v3372_v30 = vpop.f32.mrb[9].mxu0  ;;  %3385 = vmatpush3.xpose.msk.msra.mxu0 %vm806_vm2, %v2122_v29 }
 0xaae   : > { %3389 = vmatprep.subr.mxu0 %v3740_v6 }
 0xab0   : > { %3387 = vmatmul.mubr.msk.f32.vlgmr.msra.gmra.mrb[10].mxu0 %vm806_vm2, %v2047_v26  ;;  %v3059_v26 = vld [vmem:[%s4418_s11] ss:$0 sm:$0xff] }
 0xab1   : > { %3391 = vmatprep.mubr.msk.f32.mxu0 %vm3739_vm0, %v3740_v6  ;;  %3390 = vmatpush3.msra.mxu0 %v2197_v17  ;;  %v2570_v17 = vadd.s32 120, %v3965_v31 }
 0xab2   : > { %3394 = vmatprep.subr.mxu0 %v3740_v6 }
 0xab3   : > { %vm2591_vm4 = vcmp.eq.s32.totalorder %v2570_v17, %v4235_v0 }
 0xb83   : > { %v2273_v39 = vpop.f32.mrb[10].mxu0 }
 0xb84   : > { %v2277_v40 = vmul.f32 0.35355338, %v2273_v39  ;;  %v3388_v41 = vpop.f32.mrb[11].mxu0  ;;  %v2566_v39 = vadd.s32 88, %v3965_v31 }
 0xb86   : > { %v2278_v42 = vadd.f32 %v2277_v40, %v3968_v34  ;;  %vm2587_vm15 = vcmp.eq.s32.totalorder %v2566_v39, %v4235_v0  ;;  %v3071_v40 = vsel %vm2586_vm14, 1.0, %v3740_v6 }
 0xb87   : > { %v3072_v41 = vsel %vm2587_vm15, 1.0, %v3740_v6 }
 0xb88   : > { %v2279_v43 = vsel %vm806_vm2, %v2278_v42, -inf }
 0xb89   : > { %2280 = vmax.xlane.f32.xlu0 %v2279_v43  ;;  %v2567_v43 = vadd.s32 96, %v3965_v31 }
 0xc16   : > { %v2281_v44 = vpop.xlane.xlu0 %2280 }
 0xc17   : > { %v2282_v45 = vsub.f32 %v2278_v42, %v2281_v44  ;;  %v3544_v42 = vpack.c.bf16 %v3072_v41, %v3071_v40  ;;  %v2568_v44 = vadd.s32 104, %v3965_v31 }
 0xc19   : > { %v2283_v46 = vmul.f32 1.442695, %v2282_v45 }
 0xc1b   : > { %3624 = vpow2.f32 %v2283_v46 }
 0xc25   : > { %v3625_v47 = vpop.eup %3624 }
 0xc26   : > { %v2285_v48 = vsel %vm806_vm2, %v3625_v47, 0.0 }
 0xc27   : > { %2286 = vadd.xlane.f32.xlu1 %v2285_v48  ;;  %v2569_v48 = vadd.s32 112, %v3965_v31 }
 0xcb4   : > { %v2287_v50 = vpop.xlane.xlu1 %2286 }
 0xcb5   : > { %3626 = vrcp.f32 %v2287_v50  ;;  %v3076_v50 = vsel %vm2591_vm4, 1.0, %v3740_v6 }
 0xcbf   : > { %v3627_v34 = vpop.eup %3626 }
 0xcc0   : > { %v4196_v51 = vmul.f32 %v3627_v34, %v3625_v47 }
 0xcc2   : > { %3392 = vmatmul.mubr.msk.f32.vlgmr.msra.gmra.mrb[12].mxu0 %vm806_vm2, %v4196_v51  ;;  %2439 = vst.msk [vmem:[%s4205_s28] sm:$0xff] %vm806_vm2, %v4196_v51 }
 0xcc3   : > { %3395 = vmatpush3.msra.mxu0 %v3055_v52  ;;  %3396 = vmatprep.mubr.msk.f32.mxu0 %vm3739_vm0, %v3740_v6 }
 0xcc4   : > { %3523 = vmatprep.subr.bf16.mxu0 %v3738_v3 }
 0xd95   : > { %v2359_v56 = vpop.f32.mrb[12].mxu0 }
 0xd96   : > { %v3393_v57 = vpop.f32.mrb[13].mxu0  ;;  %3397 = vmatmul.mubr.msk.f32.vlgmr.msra.gmra.mrb[0].mxu0 %vm806_vm2, %v2359_v56 }
 0xd97   : > { %3442 = vmatprep.mubr.msk.f32.mxu0 %vm3739_vm0, %v3740_v6  ;;  %vm2588_vm0 = vcmp.eq.s32.totalorder %v2567_v43, %v4235_v0 }
 0xd98   : > { %v3073_v45 = vsel %vm2588_vm0, 1.0, %v3740_v6 }
 0xe69   : > { %v2434_v61 = vpop.f32.mrb[0].mxu0 }
 0xe6a   : > { %v3555_v62 = vadd.f32 %v2434_v61, %v3911_v10  ;;  %v3398_v63 = vpop.f32.mrb[1].mxu0  ;;  %v3061_v10 = vsel %vm2576_vm3, 1.0, %v3740_v6  ;;  %vm2590_vm3 = vcmp.eq.s32.totalorder %v2569_v48, %v4235_v0 }
 0xe6b   : > { %v3524_v8 = vpack.c.bf16 %v3062_v5, %v3061_v10  ;;  %v3075_v49 = vsel %vm2590_vm3, 1.0, %v3740_v6 }
 0xe6c   : > { %3408 = vmatmul.mubr.msk.f32.vlgmr.msra.gmra.mrb[28].mxu1 %vm581_vm1, %v3555_v62  ;;  %vm2589_vm1 = vcmp.eq.s32.totalorder %v2568_v44, %v4235_v0  ;;  %v3552_v34 = vpack.c.bf16 %v3076_v50, %v3075_v49 }
 0xe6d   : > { %3526 = vmatpush3.bf16.xpose.msk.msra.mxu0 %vm4247_vm5, %v3524_v8  ;;  %v3074_v46 = vsel %vm2589_vm1, 1.0, %v3740_v6 }
 0xe6e   : > { %3527 = vmatprep.subr.bf16.mxu0 %v3738_v3  ;;  %v3548_v47 = vpack.c.bf16 %v3074_v46, %v3073_v45 }
 0xe75   : > { %3530 = vmatpush3.bf16.xpose.msk.msra.mxu0 %vm4247_vm5, %v3528_v14 }
 0xe76   : > { %3531 = vmatprep.subr.bf16.mxu0 %v3738_v3 }
 0xe7d   : > { %3534 = vmatpush3.bf16.xpose.msk.msra.mxu0 %vm4247_vm5, %v3532_v20 }
 0xe7e   : > { %3535 = vmatprep.subr.bf16.mxu0 %v3738_v3 }
 0xe85   : > { %3538 = vmatpush3.bf16.xpose.msk.msra.mxu0 %vm4247_vm5, %v3536_v23 }
 0xe86   : > { %3539 = vmatprep.subr.bf16.mxu0 %v3738_v3 }
 0xe8d   : > { %3542 = vmatpush3.bf16.xpose.msk.msra.mxu0 %vm4247_vm5, %v3540_v37 }
 0xe8e   : > { %3543 = vmatprep.subr.bf16.mxu0 %v3738_v3 }
 0xe95   : > { %3546 = vmatpush3.bf16.xpose.msk.msra.mxu0 %vm4247_vm5, %v3544_v42 }
 0xe96   : > { %3547 = vmatprep.subr.bf16.mxu0 %v3738_v3 }
 0xe9d   : > { %3550 = vmatpush3.bf16.xpose.msk.msra.mxu0 %vm4247_vm5, %v3548_v47 }
 0xe9e   : > { %3551 = vmatprep.subr.bf16.mxu0 %v3738_v3 }
 0xea5   : > { %3554 = vmatpush3.bf16.xpose.msk.msra.mxu0 %vm4247_vm5, %v3552_v34 }
 0xf3f   : > { %v2520_v25 = vpop.f32.mrb[28].mxu1 }
 0xf40   : > { %v2521_v27 = vadd.f32 %v3057_v24, %v2520_v25  ;;  %v3409_v29 = vpop.f32.mrb[29].mxu1 }
 0xf42   : > { %2543 = vmax.xlane.f32.xlu1 %v2521_v27  ;;  %v2531_v30 = vmul.f32 %v3059_v26, %v2521_v27 }
 0xf44   : > { %2532 = vadd.xlane.f32.xlu0 %v2531_v30 }
 0xfcf   : > { %v2544_v52 = vpop.xlane.xlu1 %2543 }
 0xfd0   : > { %v2545_v3 = vsub.f32 %v2521_v27, %v2544_v52 }
 0xfd1   : > { %v2533_v54 = vpop.xlane.xlu0 %2532 }
 0xfd2   : > { %v2546_v55 = vmul.f32 1.442695, %v2545_v3  ;;  %v2536_v56 = vadd.f32 %v2535_v53, %v2533_v54 }
 0xfd4   : > { %3628 = vpow2.f32 %v2546_v55  ;;  %v2537_v31 = vsub.f32 0.0, %v2536_v56 }
 0xfd6   : > { %v2538_v57 = vmul.f32 1.442695, %v2537_v31 }
 0xfd8   : > { %3630 = vpow2.f32 %v2538_v57 }
 0xfde   : > { %v3629_v58 = vpop.eup %3628 }
 0xfdf   : > { %2548 = vadd.xlane.f32.xlu0 %v3629_v58 }
 0xfe2   : > { %v3631_v59 = vpop.eup %3630 }
 0xfe3   : > { %v2540_v60 = vadd.f32 1.0, %v3631_v59 }
 0xfe5   : > { %3632 = vrcp.f32 %v2540_v60 }
 0xfef   : > { %v3633_v61 = vpop.eup %3632 }
 0xff0   : > { %v2553_v62 = vmul.f32 %v3633_v61, %v4196_v51  ;;  %v2542_v2 = vsub.f32 1.0, %v3633_v61  ;;  %v3741_v51 = vmov 0  }
 0xff1   : > { %3610 = vset.pattern.permute.xlu1 %v3741_v51  ;;  %3611 = vset.pattern.permute.xlu0 %v3741_v51 }
 0xff2   : > { %3443 = vmatmul.mubr.msk.f32.vlgmr.msra.gmra.mrb[14].mxu0 %vm806_vm2, %v2553_v62 }
0x106c   : > { %v2549_v63 = vpop.xlane.xlu0 %2548 }
0x106d   : > { %3634 = vrcp.f32 %v2549_v63 }
0x1077   : > { %v3635_v0 = vpop.eup %3634 }
0x1078   : > { %v2551_v1 = vmul.f32 %v3635_v0, %v3629_v58 }
0x107a   : > { %v2552_v4 = vmul.f32 %v2551_v1, %v2542_v2 }
0x10c5   : > { %v2741_v10 = vpop.f32.mrb[14].mxu0 }
0x10c6   : > { %v2745_v5 = vadd.f32 %v2741_v10, %v2552_v4  ;;  %v3444_v7 = vpop.f32.mrb[15].mxu0 }
0x10c8   : > { %v2746_v8 = vadd.f32 1e-10, %v2745_v5 }
0x10ca   : > { %3636 = vlog2.f32 %v2746_v8 }
0x10d4   : > { %v3637_v9 = vpop.eup %3636 }
0x10d5   : > { %v2748_v11 = vmul.f32 0.6931472, %v3637_v9 }
0x10d7   : > { %2750 = vmax.xlane.f32.xlu1 %v2748_v11  ;;  %2749 = vst [vmem:[%s4324_s22] sm:$0xff] %v2748_v11 }
0x10e8   : > { %2765 = vperm.xlu1 %3610, %v2761_v12  }
0x1164   : > { %v2751_v13 = vpop.xlane.xlu1 %2750 }
0x1165   : > { %v2752_v14 = vsub.f32 %v2748_v11, %v2751_v13 }
0x1167   : > { %v2753_v15 = vmul.f32 1.442695, %v2752_v14 }
0x1168   : > { %v2766_v21 = vpop.permute.xlu1 %2765 }
0x1169   : > { %3638 = vpow2.f32 %v2753_v15  ;;  %vm2767_vm2 = vcmp.eq.s32.totalorder %v2766_v21, %v2763_v19 }
0x116a   : > { %v3094_v25 = vsel %vm2767_vm2, 1.0, %v3740_v6 }
0x1173   : > { %v3639_v16 = vpop.eup %3638 }
0x1174   : > { %2755 = vadd.xlane.f32.xlu0 %v3639_v16 }
0x1201   : > { %v2756_v18 = vpop.xlane.xlu0 %2755 }
0x1202   : > { %3640 = vlog2.f32 %v2756_v18 }
0x120c   : > { %v3641_v20 = vpop.eup %3640 }
0x120d   : > { %v2758_v22 = vmul.f32 0.6931472, %v3641_v20 }
0x120f   : > { %v2759_v23 = vadd.f32 %v2758_v22, %v2751_v13 }
0x1211   : > { %v2760_v24 = vsub.f32 %v2748_v11, %v2759_v23 }
0x1213   : > { %2774 = vadd.xlane.f32.xlu0 %v2760_v24  ;;  %v2770_v26 = vmul.f32 %v3094_v25, %v2760_v24 }
0x1217   : > { %2771 = vadd.xlane.f32.xlu0 %v2770_v26 }
0x1218   : > { %3655 = shalt.err (!%p3652_p3)
}
0x1219   : > { %s3656_s22 = scalar_lea.hbm %s4340_s3, 128  ;;  %s3660_s0 = scalar_lea.hbm %s4420_s13, 256 }
0x121a   : > { %p3657_p4 = scmp.ne.s32.totalorder %s4340_s3, %s3656_s22  ;;  %p3661_p9 = scmp.lt.u32.totalorder %s4340_s3, %s4420_s13 }
0x121b   : > { %p3662_p10 = scmp.lt.u32.totalorder %s3660_s0, %s3656_s22  ;;  %p3664_p12 = scmp.lt.u32.totalorder %s3656_s22, %s4340_s3 }
0x121c   : > { %p3658_p7 = pnand %p3657_p4, %p3865_p5 }
0x121d   : > { %p3663_p11 = por %p3662_p10, %p3661_p9 }
0x121e   : > { %p3659_p8 = pneg %p3658_p7 }
0x121f   : > { %p3665_p13 = por %p3664_p12, %p3663_p11 }
0x1221   : > { %p3666_p0 = pnand %p3665_p13, %p3659_p8 }
0x1223   : > { %3669 = shalt.err (!%p3666_p0)
}
0x1224   : > { %3562 = dma.vmem_to_hbm [thread:$0]  (%p3865_p5), %s2813_s27, 128, %s4340_s3, %s2791_s19  }
0x1225   : > { %s4447_s4 = sshll.u32 %s3848_s12, 7  ;;  %s2825_s17 = sshll.u32 %s4205_s28, 4  ;;  %s2826_s17 = int_to_ptr.vmem [resolvable:$true] %s2825_s17 }
0x1226   : > { %s4365_s24 = scalar_lea.hbm %s4421_s14, %s4447_s4  ;;  %s2796_s22 = scalar_lea.sflag [#allocation6], %s4193_s18 }
0x1227   : > { %s3670_s0 = scalar_lea.vmem %s2826_s17, 128  ;;  %s3743_s1 = smov [#allocation5]  }
0x1228   : > { %p3671_p1 = scmp.ne.s32.totalorder %s2826_s17, %s3670_s0  ;;  %s3674_s5 = sshll.u32 %s3743_s1, 4  ;;  %s3675_s5 = int_to_ptr.vmem [resolvable:$false] %s3674_s5 }
0x1229   : > { %s3676_s6 = scalar_lea.vmem %s3675_s5, 256  ;;  %p3677_p4 = scmp.lt.s32.totalorder %s2826_s17, %s3675_s5 }
0x122a   : > { %p3672_p2 = pnand %p3671_p1, %p3865_p5  ;;  %p3678_p7 = scmp.lt.s32.totalorder %s3676_s6, %s3670_s0 }
0x122c   : > { %p3673_p3 = pneg %p3672_p2  ;;  %p3679_p8 = por %p3678_p7, %p3677_p4 }
0x122e   : > { %p3680_p9 = pnand %p3679_p8, %p3673_p3 }
0x1230   : > { %3683 = shalt.err (!%p3680_p9)
}
0x1231   : > { %s3684_s12 = scalar_lea.hbm %s4365_s24, 128  ;;  %s3688_s27 = scalar_lea.hbm %s4421_s14, 256 }
0x1232   : > { %p3685_p10 = scmp.ne.s32.totalorder %s4365_s24, %s3684_s12  ;;  %p3689_p13 = scmp.lt.u32.totalorder %s4365_s24, %s4421_s14 }
0x1233   : > { %p3690_p0 = scmp.lt.u32.totalorder %s3688_s27, %s3684_s12  ;;  %p3692_p2 = scmp.lt.u32.totalorder %s3684_s12, %s4365_s24 }
0x1234   : > { %p3686_p11 = pnand %p3685_p10, %p3865_p5 }
0x1235   : > { %p3691_p1 = por %p3690_p0, %p3689_p13 }
0x1236   : > { %p3687_p12 = pneg %p3686_p11 }
0x1237   : > { %p3693_p3 = por %p3692_p2, %p3691_p1 }
0x1239   : > { %p3694_p4 = pnand %p3693_p3, %p3687_p12 }
0x123b   : > { %3697 = shalt.err (!%p3694_p4)
}
0x123c   : > { %3563 = dma.vmem_to_hbm [thread:$0]  (%p3865_p5), %s2826_s17, 128, %s4365_s24, %s2796_s22   ;;  %vm2788_vm5 = vcmask 0  }
0x123d   : > { %s571_s29 = scalar_lea.vmem %s4422_s15, %s3895_s16 }
0x12a0   : > { %v2775_v6 = vpop.xlane.xlu0 %2774 }
0x12a1   : > { %v2776_v28 = vsub.f32 0.0, %v2775_v6 }
0x12a3   : > { %v2778_v27 = vmul.f32 0.0078125, %v2776_v28 }
0x12a4   : > { %v2772_v29 = vpop.xlane.xlu0 %2771 }
0x12a5   : > { %v2773_v30 = vsub.f32 0.0, %v2772_v29  ;;  %v2780_v32 = vmul.f32 0.1, %v2778_v27 }
0x12a7   : > { %v2779_v33 = vmul.f32 0.9, %v2773_v30 }
0x12a9   : > { %v2781_v35 = vadd.f32 %v2780_v32, %v2779_v33 }
0x12ab   : > { %v2782_v36 = vrot.slane %v2781_v35, 4 }
0x12ad   : > { %v2783_v37 = vadd.f32 %v2782_v36, %v2781_v35 }
0x12af   : > { %v2784_v38 = vrot.slane %v2783_v37, 2 }
0x12b1   : > { %v2785_v39 = vadd.f32 %v2784_v38, %v2783_v37 }
0x12b3   : > { %v2786_v40 = vrot.slane %v2785_v39, 1 }
0x12b5   : > { %v2787_v41 = vadd.f32 %v2786_v40, %v2785_v39 }
0x12b7   : > { %2789 = vst.msk [vmem:[%s571_s29] sm:$0x1] %vm2788_vm5, %v2787_v41 }
0x12b8 PF: > { %p3573_p5 = scmp.ge.s32.totalorder %s3736_s23, 2  ;;  %s2840_s4 = sand.u32 1, %s3724_s20  }
0x12b9   : > { %s2841_s26 = scalar_lea.sflag [#allocation4], %s2840_s4 }
0x12ba   : > { %p3567_p7 = pnand %p3573_p5, %p3869_p6 }
0x12bc   : > { %3715 = dma.done.wait (!%p3567_p7), %s2841_s26, 128  }
0x12bd   : > { %3717 = vsyncadd (!%p3567_p7), %s2841_s26, 4294967168  ;;  %s2850_s2 = scalar_lea.sflag [#allocation6], %s2840_s4 }
0x12be   : > { %3719 = dma.done.wait (!%p3567_p7), %s2850_s2, 128  }
0x12bf   : > { %3721 = vsyncadd (!%p3567_p7), %s2850_s2, 4294967168  ;;  %s4448_s16 = sld [smem:[#allocation9_spill]]  ;;  %s4449_s22 = sld [smem:[#allocation10_spill]] }
0x12c0   : > { %p30_p8 = scmp.ge.s32.totalorder %s3852_s25, 4   ;;  %s4450_s20 = smov %s3728_s21 }
0x12c1   : > { %s4452_s23 = smov %s3852_s25 }
0x12c2   :  { %32 = sbr.rel (!%p30_p8) target bundleno = 14 (0xe), region = 160 }
0x12c5   : > { %s4451_s21 = smov %s4448_s16 }
0x12c9   :  { %2861 = vsyncpa [#allocation4], 1 }
0x12ca   :  { %2863 = vsyncpa [#allocation4 + $0x1], 1 }
0x12cb   :  { %2864 = vsyncpa [#allocation6], 1 }
0x12cc   :  { %2866 = vsyncpa [#allocation6 + $0x1], 1 }

</bundles_post_ra>
